<compile_context>
chip_gen: v6e
topology: v6e:2x2x1
jax: 0.10.0
libtpu: 0.0.40
codegen_flags: <defaults>
</compile_context>

<pallas_src>
import functools

import jax
import jax.numpy as jnp
from jax import lax
from jax.experimental import pallas as pl
from jax.experimental.pallas import tpu as pltpu


def _round_up(x, m):
    return ((x + m - 1) // m) * m


def _pick_tile(n, candidates):
    """Largest candidate that divides n (n is always a multiple of 128)."""
    for c in candidates:
        if n % c == 0:
            return c
    return 128


@functools.lru_cache(maxsize=1)
def _vmem_capacity_bytes():
    """Physical VMEM per core; fall back to the smallest (v7x, 64 MiB)."""
    try:
        cap = int(getattr(pltpu.get_tpu_info(), "vmem_capacity_bytes", 0))
        if cap > 0:
            return cap
    except Exception:
        pass
    return 64 * 1024 * 1024


# ---------------------------------------------------------------------------
# Fused path: all layers in one pallas_call, adj VMEM-resident (read from HBM
# exactly once), final average fused into the epilogue.
# ---------------------------------------------------------------------------
def _fused_kernel(x_ref, adj_hbm, o_ref, adj_vmem, *, layers, matmul_dtype):
    # Pull the whole adjacency into VMEM exactly once (single copy — no
    # BlockSpec double-buffering of the dominant VMEM consumer).
    pltpu.sync_copy(adj_hbm, adj_vmem)

    h = x_ref[...].astype(jnp.float32)
    total = h  # running sum for the layers>1 average (includes x itself)

    for _ in range(layers):  # static, unrolled; layers is small
        hh = jnp.dot(adj_vmem[...], h.astype(matmul_dtype),
                     preferred_element_type=jnp.float32)
        # F.normalize(p=2, dim=-1, eps=1e-12): x / max(||x||_2, eps)
        # == x * rsqrt(max(||x||^2, eps^2)). rsqrt runs on the (idle) EUP slot.
        sum_sq = jnp.sum(hh * hh, axis=-1, keepdims=True)
        h = hh * lax.rsqrt(jnp.maximum(sum_sq, 1e-24))
        if layers > 1:
            total = total + h

    out = total * (1.0 / (layers + 1)) if layers > 1 else h
    o_ref[...] = out.astype(o_ref.dtype)


def _gconv_fused(adj_mm, x_p, *, layers, out_dtype, vmem_limit_bytes):
    Np, Dp = x_p.shape
    assert adj_mm.shape == (Np, Np)
    kernel = functools.partial(_fused_kernel, layers=layers,
                               matmul_dtype=adj_mm.dtype)
    return pl.pallas_call(
        kernel,
        out_shape=jax.ShapeDtypeStruct((Np, Dp), out_dtype),
        grid_spec=pltpu.PrefetchScalarGridSpec(
            num_scalar_prefetch=0,
            grid=(1,),
            in_specs=[
                pl.BlockSpec((Np, Dp), lambda i: (0, 0)),  # x: whole block in VMEM
                pl.BlockSpec(memory_space=pl.ANY),         # adj: stays in HBM
            ],
            out_specs=pl.BlockSpec((Np, Dp), lambda i: (0, 0)),
            scratch_shapes=[pltpu.VMEM((Np, Np), adj_mm.dtype)],
        ),
        compiler_params=pltpu.CompilerParams(
            dimension_semantics=("arbitrary",),
            vmem_limit_bytes=vmem_limit_bytes,
        ),
    )(x_p, adj_mm)


# ---------------------------------------------------------------------------
# Fallback path: one pallas_call per layer, adj streamed tile-by-tile from HBM
# (used when adj does not fit in VMEM).
# ---------------------------------------------------------------------------
def _gconv_kernel(adj_ref, h_ref, o_ref, acc_ref, *, tk, h_resident):
    """One tile of  out = l2_normalize(adj @ h, axis=-1).

    Grid = (Np // tm, Np // tk); axis 0 tiles output rows ("parallel"),
    axis 1 is the contraction axis ("arbitrary", last). The full feature dim
    stays in one block so the row-wise L2 norm is computed in-kernel at the
    last k step. acc_ref is an f32 VMEM accumulator resident across k.
    """
    k = pl.program_id(1)

    @pl.when(k == 0)
    def _():
        acc_ref[...] = jnp.zeros_like(acc_ref)

    if h_resident:
        # h_ref holds the whole (Np, Dp) matrix (fetched once for the entire
        # grid); slice out the tk rows matching this contraction step.
        row0 = pl.multiple_of(k * tk, 128)
        h_blk = h_ref[pl.ds(row0, tk), :]
    else:
        h_blk = h_ref[...]

    acc_ref[...] += jnp.dot(adj_ref[...], h_blk,
                            preferred_element_type=jnp.float32)

    @pl.when(k == pl.num_programs(1) - 1)
    def _():
        acc = acc_ref[...]
        sum_sq = jnp.sum(acc * acc, axis=-1, keepdims=True)
        inv_norm = lax.rsqrt(jnp.maximum(sum_sq, 1e-24))
        o_ref[...] = (acc * inv_norm).astype(o_ref.dtype)


def _gconv_layer(adj, h, *, out_dtype, tm, tk, h_resident, vmem_limit_bytes):
    """out = l2_normalize(adj @ h, axis=-1) via a single pallas_call."""
    Np, Dp = h.shape
    assert adj.shape == (Np, Np)
    assert Np % tm == 0 and Np % tk == 0 and Dp % 128 == 0

    if h_resident:
        # Constant block index -> DMA'd into VMEM once, reused for all steps.
        h_spec = pl.BlockSpec((Np, Dp), lambda i, k: (0, 0))
    else:
        h_spec = pl.BlockSpec((tk, Dp), lambda i, k: (k, 0))

    kernel = functools.partial(_gconv_kernel, tk=tk, h_resident=h_resident)

    return pl.pallas_call(
        kernel,
        out_shape=jax.ShapeDtypeStruct((Np, Dp), out_dtype),
        grid_spec=pltpu.PrefetchScalarGridSpec(
            num_scalar_prefetch=0,
            grid=(Np // tm, Np // tk),
            in_specs=[
                pl.BlockSpec((tm, tk), lambda i, k: (i, k)),  # adj tile
                h_spec,                                       # h (resident/streamed)
            ],
            out_specs=pl.BlockSpec((tm, Dp), lambda i, k: (i, 0)),
            scratch_shapes=[pltpu.VMEM((tm, Dp), jnp.float32)],
        ),
        compiler_params=pltpu.CompilerParams(
            dimension_semantics=("parallel", "arbitrary"),
            vmem_limit_bytes=vmem_limit_bytes,
        ),
    )(adj, h)


# ---------------------------------------------------------------------------
# Public wrapper
# ---------------------------------------------------------------------------
@functools.partial(
    jax.jit,
    static_argnames=("layers", "matmul_dtype", "fuse_override",
                     "h_resident_override"))
def global_item_conv(x, adj, *, layers=1, matmul_dtype=jnp.bfloat16,
                     fuse_override=None, h_resident_override=None):
    """JAX/Pallas equivalent of GlobalItemConv(spare=True, layers, feat_drop=0.0)."""
    N, D = x.shape
    assert adj.shape == (N, N)
    if layers == 0:
        return x

    # ---- per-generation VMEM plan -----------------------------------------
    capacity = _vmem_capacity_bytes()                 # 128 MiB v5e/v6e, 64 MiB v7x
    budget = max(capacity - (16 << 20), 32 << 20)     # headroom for compiler scratch
    vmem_cap = max(capacity - (8 << 20), 32 << 20)    # never request all of VMEM
    two_tc = capacity <= (96 << 20)                   # v7x heuristic: 64 MiB / 2 TCs

    # ---- static tiling / padding plan --------------------------------------
    Np = _round_up(N, 128)
    Dp = _round_up(D, 128)
    mm_bytes = jnp.dtype(matmul_dtype).itemsize
    x_bytes = jnp.dtype(x.dtype).itemsize

    # ---- pad to tile multiples (zero rows/cols are inert, sliced off) ------
    x_p = jnp.pad(x, ((0, Np - N), (0, Dp - D))) if (Np != N or Dp != D) else x
    adj_p = jnp.pad(adj, ((0, Np - N), (0, Np - N))) if Np != N else adj
    # Cast adjacency to the matmul dtype once; reused across all layers.
    adj_mm = adj_p.astype(matmul_dtype)

    # ---- fused path: adj resident in VMEM across ALL layers ---------------
    fused_bytes = (Np * Np * mm_bytes          # adj scratch (single copy)
                   + 2 * Np * Dp * x_bytes     # x input block (double-buffered)
                   + 2 * Np * Dp * x_bytes     # output block (double-buffered)
                   + 6 * Np * Dp * 4)          # f32 intermediates (h, sum, temps)
    fuse = (fused_bytes <= budget) if fuse_override is None else bool(fuse_override)

    if fuse:
        vmem_limit = int(min(max(fused_bytes + (8 << 20), 32 << 20), vmem_cap))
        out = _gconv_fused(adj_mm, x_p, layers=layers, out_dtype=x.dtype,
                           vmem_limit_bytes=vmem_limit)
        return out[:N, :D]

    # ---- fallback: per-layer pallas_calls, adj streamed tile-by-tile ------
    tm_candidates = (512, 256, 128) if two_tc else (1024, 512, 256, 128)
    tm = _pick_tile(Np, tm_candidates)
    if two_tc and Np // tm < 2:
        # Keep >=2 blocks on the parallel axis only where there are 2 TCs.
        for c in (256, 128):
            if Np % c == 0 and Np // c >= 2:
                tm = c
                break
    tk = _pick_tile(Np, (1024, 512, 256, 128))

    fixed_bytes = (2 * tm * tk * mm_bytes      # adj tiles (double-buffered)
                   + 2 * tm * Dp * 4           # output tiles (f32 worst case)
                   + tm * Dp * 4)              # accumulator scratch
    h_resident_bytes = 2 * Np * Dp * mm_bytes  # whole h (pipeline-buffered 2x)
    if h_resident_override is None:
        h_resident = (h_resident_bytes + fixed_bytes) <= budget
    else:
        h_resident = bool(h_resident_override)

    vmem_est = (h_resident_bytes if h_resident
                else 2 * tk * Dp * mm_bytes) + fixed_bytes
    vmem_limit = int(min(max(vmem_est + (4 << 20), 32 << 20), vmem_cap))

    # feat_drop = 0.0 -> dropout is identity.
    h = x_p.astype(matmul_dtype)
    total = x_p.astype(jnp.float32) if layers > 1 else None
    for layer in range(layers):
        # Intermediate layers are written back in the matmul dtype (halves
        # writeback bytes, no separate per-layer XLA cast); only a lone-layer
        # result is emitted directly in x.dtype.
        layer_out_dtype = x.dtype if layers == 1 else matmul_dtype
        h = _gconv_layer(adj_mm, h, out_dtype=layer_out_dtype, tm=tm, tk=tk,
                         h_resident=h_resident, vmem_limit_bytes=vmem_limit)
        if layers > 1:
            total = total + h.astype(jnp.float32)
    if layers > 1:
        h = (total * (1.0 / (layers + 1))).astype(x.dtype)
    return h[:N, :D]


# ---------------------------------------------------------------------------
if __name__ == "__main__":
    key = jax.random.PRNGKey(0)

    def make_inputs(n, d, key):
        k_x, k_adj = jax.random.split(key)
        x = jax.random.normal(k_x, (n, d), dtype=jnp.float32)
        raw = jax.random.uniform(k_adj, (n, n), dtype=jnp.float32)
        adj = jnp.where(raw > 0.9, raw, 0.0)
        adj = adj + jnp.eye(n, dtype=jnp.float32)          # self loops
        adj = adj / jnp.sum(adj, axis=-1, keepdims=True)   # row-normalize
        return x, adj

    def ref(x, adj, layers, mm_dtype=None):
        a = adj if mm_dtype is None else adj.astype(mm_dtype).astype(jnp.float32)
        h = x
        final = [x]
        for _ in range(layers):
            hh = h if mm_dtype is None else h.astype(mm_dtype).astype(jnp.float32)
            h = a @ hh
            sum_sq = jnp.maximum(jnp.sum(h * h, axis=-1, keepdims=True), 1e-24)
            h = h * lax.rsqrt(sum_sq)
            final.append(h)
        if layers > 1:
            h = sum(final) / (layers + 1)
        return h

    k1, k2 = jax.random.split(key)

    # Case 1: tile-aligned shapes, both layer counts — default (fused) path.
    N, D = 512, 128
    x, adj = make_inputs(N, D, k1)
    for layers in (1, 3):
        out = jax.block_until_ready(global_item_conv(x, adj, layers=layers))
        assert out.shape == (N, D)
        r_bf16 = ref(x, adj, layers, jnp.bfloat16)
        assert jnp.max(jnp.abs(out - r_bf16)) < 2e-3, "bf16-matched ref mismatch"
        r_f32 = ref(x, adj, layers, None)
        assert jnp.max(jnp.abs(out - r_f32)) < 2e-2, "f32 ref mismatch"

    # Case 1b: force the per-layer (unfused) path, resident h.
    out_u = jax.block_until_ready(
        global_item_conv(x, adj, layers=1, fuse_override=False))
    assert jnp.max(jnp.abs(out_u - ref(x, adj, 1, jnp.bfloat16))) < 2e-3

    # Case 1c: unfused + streamed h, multi-layer (bf16 intermediate storage
    # adds a little drift vs the f32-intermediate bf16-matched ref).
    out_s = jax.block_until_ready(
        global_item_conv(x, adj, layers=3, fuse_override=False,
                         h_resident_override=False))
    assert jnp.max(jnp.abs(out_s - ref(x, adj, 3, jnp.bfloat16))) < 5e-3

    # Case 2: non-tile-multiple N and D exercise the padding path (fused).
    N2, D2 = 300, 96
    x2, adj2 = make_inputs(N2, D2, k2)
    out2 = jax.block_until_ready(global_item_conv(x2, adj2, layers=2))
    assert out2.shape == (N2, D2)
    assert jnp.max(jnp.abs(out2 - ref(x2, adj2, 2, jnp.bfloat16))) < 2e-3

    print("KERNEL_OK")
</pallas_src>

<mosaic_0001>
module attributes {stable_mosaic.version = 11 : i64} {
  func.func @_fused_kernel(%arg0: i32, %arg1: memref<512x128xf32, #tpu.memory_space<vmem>>, %arg2: memref<512x512xbf16, #tpu.memory_space<any>>, %arg3: memref<512x128xf32, #tpu.memory_space<vmem>>, %arg4: memref<512x512xbf16, #tpu.memory_space<vmem>>) attributes {dimension_semantics = [#tpu.dimension_semantics<arbitrary>], iteration_bounds = array<i64: 1>, scalar_prefetch = 0 : i64, scratch_operands = 1 : i64, tpu.core_type = #tpu.core_type<tc>, window_params = [{pipeline_mode = #tpu.pipeline_mode<synchronous>, transform_indices = @transform_0, window_bounds = array<i64: 512, 128>}, {}, {pipeline_mode = #tpu.pipeline_mode<synchronous>, transform_indices = @transform_2, window_bounds = array<i64: 512, 128>}]} {
    "tpu.region"() ({
      %13 = tpu.sem_alloc : memref<!tpu.dma_semaphore, #tpu.memory_space<semaphore_mem>>
      tpu.enqueue_dma source(%arg2 : memref<512x512xbf16, #tpu.memory_space<any>>) target(%arg4 : memref<512x512xbf16, #tpu.memory_space<vmem>>) target_semaphore(%13 : memref<!tpu.dma_semaphore, #tpu.memory_space<semaphore_mem>>)
      tpu.wait_dma2 semaphore(%13 : memref<!tpu.dma_semaphore, #tpu.memory_space<semaphore_mem>>) src(%arg2 : memref<512x512xbf16, #tpu.memory_space<any>>) dst(%arg4 : memref<512x512xbf16, #tpu.memory_space<vmem>>)
      tpu.yield
    }) : () -> ()
    %c0 = arith.constant 0 : index
    %c0_0 = arith.constant 0 : index
    %0 = vector.load %arg1[%c0, %c0_0] : memref<512x128xf32, #tpu.memory_space<vmem>>, vector<512x128xf32>
    %c0_1 = arith.constant 0 : index
    %c0_2 = arith.constant 0 : index
    %1 = vector.load %arg4[%c0_1, %c0_2] : memref<512x512xbf16, #tpu.memory_space<vmem>>, vector<512x512xbf16>
    %2 = arith.truncf %0 : vector<512x128xf32> to vector<512x128xbf16>
    %cst = arith.constant dense<0.000000e+00> : vector<512x128xf32>
    %3 = tpu.matmul %1, %2, %cst {dimension_numbers = #tpu.dot_dimension_numbers<[1], [0], [0], [1], [0, 0, 1, 1], [], []>} : vector<512x512xbf16>, vector<512x128xbf16>, vector<512x128xf32> -> vector<512x128xf32>
    %4 = arith.mulf %3, %3 : vector<512x128xf32>
    %cst_3 = arith.constant dense<0.000000e+00> : vector<512xf32>
    %5 = vector.multi_reduction <add>, %4, %cst_3 [1] : vector<512x128xf32> to vector<512xf32>
    %6 = vector.shape_cast %5 : vector<512xf32> to vector<512x1xf32>
    %cst_4 = arith.constant 1.000000e-24 : f32
    %7 = vector.broadcast %cst_4 : f32 to vector<512x1xf32>
    %8 = arith.maximumf %6, %7 : vector<512x1xf32>
    %9 = math.rsqrt %8 : vector<512x1xf32>
    %10 = vector.broadcast %9 : vector<512x1xf32> to vector<512x128xf32>
    %11 = arith.mulf %3, %10 : vector<512x128xf32>
    %c0_5 = arith.constant 0 : index
    %c0_6 = arith.constant 0 : index
    %12 = vector.load %arg3[%c0_5, %c0_6] : memref<512x128xf32, #tpu.memory_space<vmem>>, vector<512x128xf32>
    tpu.vector_store %arg3[%c0_5, %c0_6], %11 {strides = array<i32>} : memref<512x128xf32, #tpu.memory_space<vmem>>, vector<512x128xf32>,
    return
  }
  func.func @transform_0(%arg0: i32) -> (i32, i32) {
    %c0_i32 = arith.constant 0 : i32
    %c0_i32_0 = arith.constant 0 : i32
    %c0_i32_1 = arith.constant 0 : i32
    return %c0_i32, %c0_i32_0 : i32, i32
  }
  func.func @transform_2(%arg0: i32) -> (i32, i32) {
    %c0_i32 = arith.constant 0 : i32
    %c0_i32_0 = arith.constant 0 : i32
    %c0_i32_1 = arith.constant 0 : i32
    return %c0_i32, %c0_i32_0 : i32, i32
  }
}

</mosaic_0001>

<bundles_post_ra>
// kernel: global_item_conv.1
= control target key start
LH: loop header
LB: loop body
LE: loop exit
PB: predicated region body
PF: predicated region fallthrough
CT: control target
= control target key end

     0   :  { %7 = vsyncpa [#allocation4], 0  ;;  %s3972_s0 = inlined_call_operand.vmem [shape: f32[512,128], index: 0, kind: input, shape index: {}]   ;;  %s3973_s1 = inlined_call_operand.vmem [shape: bf16[512,512], index: 1, kind: input, shape index: {}]   ;;  %s3974_s2 = inlined_call_operand.hbm [shape: f32[512,128], index: 2, kind: output, shape index: {}]  }
   0x1   :  { %v2532_v0 = vld [vmem:[%s3973_s1] sm:$0xff]  ;;  %v2537_v1 = vld [vmem:[%s3973_s1 + $0x8] sm:$0xff]  ;;  %v2542_v2 = vld [vmem:[%s3973_s1 + $0x10] sm:$0xff] }
   0x2   :  { %v2547_v3 = vld [vmem:[%s3973_s1 + $0x18] sm:$0xff]  ;;  %v2552_v4 = vld [vmem:[%s3973_s1 + $0x20] sm:$0xff]  ;;  %v2557_v5 = vld [vmem:[%s3973_s1 + $0x28] sm:$0xff] }
   0x3   :  { %v2562_v6 = vld [vmem:[%s3973_s1 + $0x30] sm:$0xff]  ;;  %v2567_v7 = vld [vmem:[%s3973_s1 + $0x38] sm:$0xff]  ;;  %v2572_v8 = vld [vmem:[%s3973_s1 + $0x40] sm:$0xff] }
   0x4   :  { %v2577_v9 = vld [vmem:[%s3973_s1 + $0x48] sm:$0xff]  ;;  %v2582_v10 = vld [vmem:[%s3973_s1 + $0x50] sm:$0xff]  ;;  %v2587_v11 = vld [vmem:[%s3973_s1 + $0x58] sm:$0xff] }
   0x5   :  { %v2592_v12 = vld [vmem:[%s3973_s1 + $0x60] sm:$0xff]  ;;  %v2597_v13 = vld [vmem:[%s3973_s1 + $0x68] sm:$0xff]  ;;  %v2602_v14 = vld [vmem:[%s3973_s1 + $0x70] sm:$0xff] }
   0x6   :  { %v2607_v15 = vld [vmem:[%s3973_s1 + $0x78] sm:$0xff]  ;;  %v2612_v16 = vld [vmem:[%s3973_s1 + $0x80] sm:$0xff]  ;;  %v2617_v17 = vld [vmem:[%s3973_s1 + $0x88] sm:$0xff] }
   0x7   :  { %v2622_v18 = vld [vmem:[%s3973_s1 + $0x90] sm:$0xff]  ;;  %v2627_v19 = vld [vmem:[%s3973_s1 + $0x98] sm:$0xff]  ;;  %v2632_v20 = vld [vmem:[%s3973_s1 + $0xa0] sm:$0xff] }
   0x8   :  { %v2637_v21 = vld [vmem:[%s3973_s1 + $0xa8] sm:$0xff]  ;;  %v2642_v22 = vld [vmem:[%s3973_s1 + $0xb0] sm:$0xff]  ;;  %v2647_v23 = vld [vmem:[%s3973_s1 + $0xb8] sm:$0xff] }
   0x9   :  { %v2652_v24 = vld [vmem:[%s3973_s1 + $0xc0] sm:$0xff]  ;;  %v2657_v25 = vld [vmem:[%s3973_s1 + $0xc8] sm:$0xff]  ;;  %v2662_v26 = vld [vmem:[%s3973_s1 + $0xd0] sm:$0xff] }
   0xa   :  { %v2667_v27 = vld [vmem:[%s3973_s1 + $0xd8] sm:$0xff]  ;;  %v2672_v28 = vld [vmem:[%s3973_s1 + $0xe0] sm:$0xff]  ;;  %v2677_v29 = vld [vmem:[%s3973_s1 + $0xe8] sm:$0xff] }
   0xb   :  { %v2682_v30 = vld [vmem:[%s3973_s1 + $0xf0] sm:$0xff]  ;;  %v2687_v31 = vld [vmem:[%s3973_s1 + $0xf8] sm:$0xff]  ;;  %v2692_v32 = vld [vmem:[%s3973_s1 + $0x100] sm:$0xff] }
   0xc   :  { %v2697_v33 = vld [vmem:[%s3973_s1 + $0x108] sm:$0xff]  ;;  %v2702_v34 = vld [vmem:[%s3973_s1 + $0x110] sm:$0xff]  ;;  %v2707_v35 = vld [vmem:[%s3973_s1 + $0x118] sm:$0xff] }
   0xd   :  { %v2712_v36 = vld [vmem:[%s3973_s1 + $0x120] sm:$0xff]  ;;  %v2717_v37 = vld [vmem:[%s3973_s1 + $0x128] sm:$0xff]  ;;  %v2722_v38 = vld [vmem:[%s3973_s1 + $0x130] sm:$0xff] }
   0xe   :  { %v2727_v39 = vld [vmem:[%s3973_s1 + $0x138] sm:$0xff]  ;;  %v2732_v40 = vld [vmem:[%s3973_s1 + $0x140] sm:$0xff]  ;;  %v2737_v41 = vld [vmem:[%s3973_s1 + $0x148] sm:$0xff] }
   0xf   :  { %v2742_v42 = vld [vmem:[%s3973_s1 + $0x150] sm:$0xff]  ;;  %v2747_v43 = vld [vmem:[%s3973_s1 + $0x158] sm:$0xff]  ;;  %v2752_v44 = vld [vmem:[%s3973_s1 + $0x160] sm:$0xff] }
  0x10   :  { %v2757_v45 = vld [vmem:[%s3973_s1 + $0x168] sm:$0xff]  ;;  %v2762_v46 = vld [vmem:[%s3973_s1 + $0x170] sm:$0xff]  ;;  %v2767_v47 = vld [vmem:[%s3973_s1 + $0x178] sm:$0xff] }
  0x11   :  { %v2772_v48 = vld [vmem:[%s3973_s1 + $0x180] sm:$0xff]  ;;  %v2777_v49 = vld [vmem:[%s3973_s1 + $0x188] sm:$0xff]  ;;  %v2782_v50 = vld [vmem:[%s3973_s1 + $0x190] sm:$0xff] }
  0x12   :  { %4052 = vst [vmem:[#allocation9_spill] sm:$0xff] %v2777_v49  ;;  %v2787_v51 = vld [vmem:[%s3973_s1 + $0x198] sm:$0xff]  ;;  %v2792_v52 = vld [vmem:[%s3973_s1 + $0x1a0] sm:$0xff]  ;;  %v2797_v53 = vld [vmem:[%s3973_s1 + $0x1a8] sm:$0xff] }
  0x13   :  { %4053 = vst [vmem:[#allocation10_spill] sm:$0xff] %v2792_v52  ;;  %4054 = vst [vmem:[#allocation11_spill] sm:$0xff] %v2797_v53  ;;  %v2802_v54 = vld [vmem:[%s3973_s1 + $0x1b0] sm:$0xff]  ;;  %v2807_v55 = vld [vmem:[%s3973_s1 + $0x1b8] sm:$0xff] }
  0x14   :  { %4055 = vst [vmem:[#allocation12_spill] sm:$0xff] %v2802_v54  ;;  %4056 = vst [vmem:[#allocation13_spill] sm:$0xff] %v2807_v55  ;;  %v2812_v56 = vld [vmem:[%s3973_s1 + $0x1c0] sm:$0xff]  ;;  %v2817_v57 = vld [vmem:[%s3973_s1 + $0x1c8] sm:$0xff] }
  0x15   :  { %4057 = vst [vmem:[#allocation14_spill] sm:$0xff] %v2812_v56  ;;  %4058 = vst [vmem:[#allocation15_spill] sm:$0xff] %v2817_v57  ;;  %v2822_v58 = vld [vmem:[%s3973_s1 + $0x1d0] sm:$0xff]  ;;  %v2827_v59 = vld [vmem:[%s3973_s1 + $0x1d8] sm:$0xff] }
  0x16   :  { %4059 = vst [vmem:[#allocation16_spill] sm:$0xff] %v2822_v58  ;;  %4060 = vst [vmem:[#allocation17_spill] sm:$0xff] %v2827_v59  ;;  %v2832_v60 = vld [vmem:[%s3973_s1 + $0x1e0] sm:$0xff]  ;;  %v2837_v61 = vld [vmem:[%s3973_s1 + $0x1e8] sm:$0xff] }
  0x17   :  { %4061 = vst [vmem:[#allocation18_spill] sm:$0xff] %v2832_v60  ;;  %4062 = vst [vmem:[#allocation19_spill] sm:$0xff] %v2837_v61  ;;  %v2842_v62 = vld [vmem:[%s3973_s1 + $0x1f0] sm:$0xff]  ;;  %v2847_v63 = vld [vmem:[%s3973_s1 + $0x1f8] sm:$0xff] }
  0x18   :  { %4063 = vst [vmem:[#allocation20_spill] sm:$0xff] %v2842_v62  ;;  %4064 = vst [vmem:[#allocation21_spill] sm:$0xff] %v2847_v63  ;;  %v2852_v57 = vld [vmem:[%s3973_s1 + $0x200] sm:$0xff]  ;;  %v2857_v60 = vld [vmem:[%s3973_s1 + $0x208] sm:$0xff] }
  0x19   :  { %4065 = vst [vmem:[#allocation22_spill] sm:$0xff] %v2852_v57  ;;  %4066 = vst [vmem:[#allocation23_spill] sm:$0xff] %v2857_v60  ;;  %v2862_v61 = vld [vmem:[%s3973_s1 + $0x210] sm:$0xff]  ;;  %v2867_v62 = vld [vmem:[%s3973_s1 + $0x218] sm:$0xff] }
  0x1a   :  { %4067 = vst [vmem:[#allocation24_spill] sm:$0xff] %v2862_v61  ;;  %4068 = vst [vmem:[#allocation25_spill] sm:$0xff] %v2867_v62  ;;  %v2872_v63 = vld [vmem:[%s3973_s1 + $0x220] sm:$0xff]  ;;  %v2877_v57 = vld [vmem:[%s3973_s1 + $0x228] sm:$0xff] }
  0x1b   :  { %4069 = vst [vmem:[#allocation26_spill] sm:$0xff] %v2872_v63  ;;  %4070 = vst [vmem:[#allocation27_spill] sm:$0xff] %v2877_v57  ;;  %v2882_v60 = vld [vmem:[%s3973_s1 + $0x230] sm:$0xff]  ;;  %v2887_v61 = vld [vmem:[%s3973_s1 + $0x238] sm:$0xff] }
  0x1c   :  { %4071 = vst [vmem:[#allocation28_spill] sm:$0xff] %v2882_v60  ;;  %4072 = vst [vmem:[#allocation29_spill] sm:$0xff] %v2887_v61  ;;  %v2892_v62 = vld [vmem:[%s3973_s1 + $0x240] sm:$0xff]  ;;  %v2897_v63 = vld [vmem:[%s3973_s1 + $0x248] sm:$0xff] }
  0x1d   :  { %4073 = vst [vmem:[#allocation30_spill] sm:$0xff] %v2892_v62  ;;  %4074 = vst [vmem:[#allocation31_spill] sm:$0xff] %v2897_v63  ;;  %v2902_v57 = vld [vmem:[%s3973_s1 + $0x250] sm:$0xff]  ;;  %v2907_v60 = vld [vmem:[%s3973_s1 + $0x258] sm:$0xff] }
  0x1e   :  { %4075 = vst [vmem:[#allocation32_spill] sm:$0xff] %v2902_v57  ;;  %4076 = vst [vmem:[#allocation33_spill] sm:$0xff] %v2907_v60  ;;  %v2912_v61 = vld [vmem:[%s3973_s1 + $0x260] sm:$0xff]  ;;  %v2917_v62 = vld [vmem:[%s3973_s1 + $0x268] sm:$0xff] }
  0x1f   :  { %4077 = vst [vmem:[#allocation34_spill] sm:$0xff] %v2912_v61  ;;  %4078 = vst [vmem:[#allocation35_spill] sm:$0xff] %v2917_v62  ;;  %v2922_v63 = vld [vmem:[%s3973_s1 + $0x270] sm:$0xff]  ;;  %v2927_v57 = vld [vmem:[%s3973_s1 + $0x278] sm:$0xff] }
  0x20   :  { %4079 = vst [vmem:[#allocation36_spill] sm:$0xff] %v2922_v63  ;;  %4080 = vst [vmem:[#allocation37_spill] sm:$0xff] %v2927_v57  ;;  %v2932_v60 = vld [vmem:[%s3973_s1 + $0x280] sm:$0xff]  ;;  %v2937_v61 = vld [vmem:[%s3973_s1 + $0x288] sm:$0xff] }
  0x21   :  { %4081 = vst [vmem:[#allocation38_spill] sm:$0xff] %v2932_v60  ;;  %4082 = vst [vmem:[#allocation39_spill] sm:$0xff] %v2937_v61  ;;  %v2942_v62 = vld [vmem:[%s3973_s1 + $0x290] sm:$0xff]  ;;  %v2947_v63 = vld [vmem:[%s3973_s1 + $0x298] sm:$0xff] }
  0x22   :  { %4083 = vst [vmem:[#allocation40_spill] sm:$0xff] %v2942_v62  ;;  %4084 = vst [vmem:[#allocation41_spill] sm:$0xff] %v2947_v63  ;;  %v2952_v57 = vld [vmem:[%s3973_s1 + $0x2a0] sm:$0xff]  ;;  %v2957_v60 = vld [vmem:[%s3973_s1 + $0x2a8] sm:$0xff] }
  0x23   :  { %4085 = vst [vmem:[#allocation42_spill] sm:$0xff] %v2952_v57  ;;  %4086 = vst [vmem:[#allocation43_spill] sm:$0xff] %v2957_v60  ;;  %v2962_v61 = vld [vmem:[%s3973_s1 + $0x2b0] sm:$0xff]  ;;  %v2967_v62 = vld [vmem:[%s3973_s1 + $0x2b8] sm:$0xff] }
  0x24   :  { %4087 = vst [vmem:[#allocation44_spill] sm:$0xff] %v2962_v61  ;;  %4088 = vst [vmem:[#allocation45_spill] sm:$0xff] %v2967_v62  ;;  %v2972_v63 = vld [vmem:[%s3973_s1 + $0x2c0] sm:$0xff]  ;;  %v2977_v57 = vld [vmem:[%s3973_s1 + $0x2c8] sm:$0xff] }
  0x25   :  { %4089 = vst [vmem:[#allocation46_spill] sm:$0xff] %v2972_v63  ;;  %4090 = vst [vmem:[#allocation47_spill] sm:$0xff] %v2977_v57  ;;  %v2982_v60 = vld [vmem:[%s3973_s1 + $0x2d0] sm:$0xff]  ;;  %v2987_v61 = vld [vmem:[%s3973_s1 + $0x2d8] sm:$0xff] }
  0x26   :  { %4091 = vst [vmem:[#allocation48_spill] sm:$0xff] %v2982_v60  ;;  %4092 = vst [vmem:[#allocation49_spill] sm:$0xff] %v2987_v61  ;;  %v2992_v62 = vld [vmem:[%s3973_s1 + $0x2e0] sm:$0xff]  ;;  %v2997_v63 = vld [vmem:[%s3973_s1 + $0x2e8] sm:$0xff] }
  0x27   :  { %4093 = vst [vmem:[#allocation50_spill] sm:$0xff] %v2992_v62  ;;  %4094 = vst [vmem:[#allocation51_spill] sm:$0xff] %v2997_v63  ;;  %v3002_v57 = vld [vmem:[%s3973_s1 + $0x2f0] sm:$0xff]  ;;  %v3007_v60 = vld [vmem:[%s3973_s1 + $0x2f8] sm:$0xff] }
  0x28   :  { %4095 = vst [vmem:[#allocation52_spill] sm:$0xff] %v3002_v57  ;;  %4096 = vst [vmem:[#allocation53_spill] sm:$0xff] %v3007_v60  ;;  %v3012_v61 = vld [vmem:[%s3973_s1 + $0x300] sm:$0xff]  ;;  %v3017_v62 = vld [vmem:[%s3973_s1 + $0x308] sm:$0xff] }
  0x29   :  { %4097 = vst [vmem:[#allocation54_spill] sm:$0xff] %v3012_v61  ;;  %4098 = vst [vmem:[#allocation55_spill] sm:$0xff] %v3017_v62  ;;  %v3022_v63 = vld [vmem:[%s3973_s1 + $0x310] sm:$0xff]  ;;  %v3027_v57 = vld [vmem:[%s3973_s1 + $0x318] sm:$0xff] }
  0x2a   :  { %4099 = vst [vmem:[#allocation56_spill] sm:$0xff] %v3022_v63  ;;  %4100 = vst [vmem:[#allocation57_spill] sm:$0xff] %v3027_v57  ;;  %v3032_v60 = vld [vmem:[%s3973_s1 + $0x320] sm:$0xff]  ;;  %v3037_v61 = vld [vmem:[%s3973_s1 + $0x328] sm:$0xff] }
  0x2b   :  { %4101 = vst [vmem:[#allocation58_spill] sm:$0xff] %v3032_v60  ;;  %4102 = vst [vmem:[#allocation59_spill] sm:$0xff] %v3037_v61  ;;  %v3042_v62 = vld [vmem:[%s3973_s1 + $0x330] sm:$0xff]  ;;  %v3047_v63 = vld [vmem:[%s3973_s1 + $0x338] sm:$0xff] }
  0x2c   :  { %4103 = vst [vmem:[#allocation60_spill] sm:$0xff] %v3042_v62  ;;  %4104 = vst [vmem:[#allocation61_spill] sm:$0xff] %v3047_v63  ;;  %v3052_v57 = vld [vmem:[%s3973_s1 + $0x340] sm:$0xff]  ;;  %v3057_v60 = vld [vmem:[%s3973_s1 + $0x348] sm:$0xff] }
  0x2d   :  { %4105 = vst [vmem:[#allocation62_spill] sm:$0xff] %v3052_v57  ;;  %4106 = vst [vmem:[#allocation63_spill] sm:$0xff] %v3057_v60  ;;  %v3062_v61 = vld [vmem:[%s3973_s1 + $0x350] sm:$0xff]  ;;  %v3067_v62 = vld [vmem:[%s3973_s1 + $0x358] sm:$0xff] }
  0x2e   :  { %4107 = vst [vmem:[#allocation64_spill] sm:$0xff] %v3062_v61  ;;  %4108 = vst [vmem:[#allocation65_spill] sm:$0xff] %v3067_v62  ;;  %v3072_v63 = vld [vmem:[%s3973_s1 + $0x360] sm:$0xff]  ;;  %v3077_v57 = vld [vmem:[%s3973_s1 + $0x368] sm:$0xff] }
  0x2f   :  { %4109 = vst [vmem:[#allocation66_spill] sm:$0xff] %v3072_v63  ;;  %4110 = vst [vmem:[#allocation67_spill] sm:$0xff] %v3077_v57  ;;  %v3082_v60 = vld [vmem:[%s3973_s1 + $0x370] sm:$0xff]  ;;  %v3087_v61 = vld [vmem:[%s3973_s1 + $0x378] sm:$0xff] }
  0x30   :  { %4111 = vst [vmem:[#allocation68_spill] sm:$0xff] %v3082_v60  ;;  %4112 = vst [vmem:[#allocation69_spill] sm:$0xff] %v3087_v61  ;;  %v3092_v62 = vld [vmem:[%s3973_s1 + $0x380] sm:$0xff]  ;;  %v3097_v63 = vld [vmem:[%s3973_s1 + $0x388] sm:$0xff] }
  0x31   :  { %4113 = vst [vmem:[#allocation70_spill] sm:$0xff] %v3092_v62  ;;  %4114 = vst [vmem:[#allocation71_spill] sm:$0xff] %v3097_v63  ;;  %v3102_v57 = vld [vmem:[%s3973_s1 + $0x390] sm:$0xff]  ;;  %v3107_v60 = vld [vmem:[%s3973_s1 + $0x398] sm:$0xff] }
  0x32   :  { %4115 = vst [vmem:[#allocation72_spill] sm:$0xff] %v3102_v57  ;;  %4116 = vst [vmem:[#allocation73_spill] sm:$0xff] %v3107_v60  ;;  %v3112_v61 = vld [vmem:[%s3973_s1 + $0x3a0] sm:$0xff]  ;;  %v3117_v62 = vld [vmem:[%s3973_s1 + $0x3a8] sm:$0xff] }
  0x33   :  { %4117 = vst [vmem:[#allocation74_spill] sm:$0xff] %v3112_v61  ;;  %4118 = vst [vmem:[#allocation75_spill] sm:$0xff] %v3117_v62  ;;  %v3122_v63 = vld [vmem:[%s3973_s1 + $0x3b0] sm:$0xff]  ;;  %v3127_v57 = vld [vmem:[%s3973_s1 + $0x3b8] sm:$0xff] }
  0x34   :  { %4119 = vst [vmem:[#allocation76_spill] sm:$0xff] %v3122_v63  ;;  %4120 = vst [vmem:[#allocation77_spill] sm:$0xff] %v3127_v57  ;;  %v3132_v60 = vld [vmem:[%s3973_s1 + $0x3c0] sm:$0xff]  ;;  %v3137_v61 = vld [vmem:[%s3973_s1 + $0x3c8] sm:$0xff] }
  0x35   :  { %4121 = vst [vmem:[#allocation78_spill] sm:$0xff] %v3132_v60  ;;  %4122 = vst [vmem:[#allocation79_spill] sm:$0xff] %v3137_v61  ;;  %v3142_v62 = vld [vmem:[%s3973_s1 + $0x3d0] sm:$0xff]  ;;  %v3147_v63 = vld [vmem:[%s3973_s1 + $0x3d8] sm:$0xff] }
  0x36   :  { %4123 = vst [vmem:[#allocation80_spill] sm:$0xff] %v3142_v62  ;;  %4124 = vst [vmem:[#allocation81_spill] sm:$0xff] %v3147_v63  ;;  %v3152_v57 = vld [vmem:[%s3973_s1 + $0x3e0] sm:$0xff]  ;;  %v3157_v60 = vld [vmem:[%s3973_s1 + $0x3e8] sm:$0xff] }
  0x37   :  { %4125 = vst [vmem:[#allocation82_spill] sm:$0xff] %v3152_v57  ;;  %4126 = vst [vmem:[#allocation83_spill] sm:$0xff] %v3157_v60  ;;  %v3162_v61 = vld [vmem:[%s3973_s1 + $0x3f0] sm:$0xff]  ;;  %v3167_v62 = vld [vmem:[%s3973_s1 + $0x3f8] sm:$0xff] }
  0x38   :  { %4127 = vst [vmem:[#allocation84_spill] sm:$0xff] %v3162_v61  ;;  %4128 = vst [vmem:[#allocation85_spill] sm:$0xff] %v3167_v62 }
  0x39   :  { %307 = vsyncadd [#allocation5], 16384 }
  0x3a   :  { %2506 = dma.done.wait [#allocation5], 16384 }
  0x3b   :  { %2507 = vsyncadd [#allocation5], 4294950912  ;;  %v326_v57 = vld [vmem:[%s3972_s0 + $0x70] sm:$0xff]  ;;  %v327_v60 = vld [vmem:[%s3972_s0 + $0x78] sm:$0xff]  ;;  %v2227_v63 = vcombine.high %v2532_v0, %v2542_v2  ;;  %v2229_v62 = vcombine.high %v2537_v1, %v2547_v3  ;;  %v2510_v59 = vmov 0  }
  0x3c   :  { %v358_v61 = vld [vmem:[%s3972_s0 + $0x170] sm:$0xff]  ;;  %1176 = vmatprep.subr.bf16.mxu0 %v2510_v59  ;;  %1465 = vmatprep.subr.bf16.mxu1 %v2510_v59  ;;  %v511_v56 = vpack.c.bf16 %v327_v60, %v326_v57  ;;  %v359_v58 = vld [vmem:[%s3972_s0 + $0x178] sm:$0xff]  ;;  %v324_v53 = vld [vmem:[%s3972_s0 + $0x60] sm:$0xff] }
  0x3d   :  { %v325_v55 = vld [vmem:[%s3972_s0 + $0x68] sm:$0xff]  ;;  %v527_v52 = vpack.c.bf16 %v359_v58, %v358_v61  ;;  %v356_v54 = vld [vmem:[%s3972_s0 + $0x160] sm:$0xff]  ;;  %1208 = vmatprep.mubr.bf16.mxu0 %v2227_v63  ;;  %1497 = vmatprep.mubr.bf16.mxu1 %v2229_v62  ;;  %v322_v58 = vld [vmem:[%s3972_s0 + $0x50] sm:$0xff] }
  0x3e   :  { %v357_v57 = vld [vmem:[%s3972_s0 + $0x168] sm:$0xff]  ;;  %1177 = vmatpush1.bf16.msra.mxu0 %v511_v56  ;;  %v510_v60 = vpack.c.bf16 %v325_v55, %v324_v53  ;;  %v323_v61 = vld [vmem:[%s3972_s0 + $0x58] sm:$0xff]  ;;  %v354_v62 = vld [vmem:[%s3972_s0 + $0x150] sm:$0xff] }
  0x3f   :  { %1466 = vmatpush1.bf16.msra.mxu1 %v527_v52  ;;  %1178 = vmatprep.subr.bf16.mxu0 %v2510_v59  ;;  %v526_v49 = vpack.c.bf16 %v357_v57, %v356_v54  ;;  %v355_v52 = vld [vmem:[%s3972_s0 + $0x158] sm:$0xff]  ;;  %v509_v53 = vpack.c.bf16 %v323_v61, %v322_v58  ;;  %v320_v55 = vld [vmem:[%s3972_s0 + $0x40] sm:$0xff]  ;;  %v321_v56 = vld [vmem:[%s3972_s0 + $0x48] sm:$0xff] }
  0x40   :  { %1467 = vmatprep.subr.bf16.mxu1 %v2510_v59  ;;  %v525_v54 = vpack.c.bf16 %v355_v52, %v354_v62  ;;  %v352_v63 = vld [vmem:[%s3972_s0 + $0x140] sm:$0xff]  ;;  %v508_v57 = vpack.c.bf16 %v321_v56, %v320_v55  ;;  %v318_v58 = vld [vmem:[%s3972_s0 + $0x30] sm:$0xff]  ;;  %v319_v61 = vld [vmem:[%s3972_s0 + $0x38] sm:$0xff] }
  0x41   :  { %v350_v62 = vld [vmem:[%s3972_s0 + $0x130] sm:$0xff]  ;;  %v351_v52 = vld [vmem:[%s3972_s0 + $0x138] sm:$0xff]  ;;  %v316_v55 = vld [vmem:[%s3972_s0 + $0x20] sm:$0xff] }
  0x42   :  { %1179 = vmatpush1.bf16.msra.mxu0 %v510_v60  ;;  %v317_v56 = vld [vmem:[%s3972_s0 + $0x28] sm:$0xff] }
  0x43   :  { %1468 = vmatpush1.bf16.msra.mxu1 %v526_v49  ;;  %1180 = vmatprep.subr.bf16.mxu0 %v2510_v59  ;;  %v353_v49 = vld [vmem:[%s3972_s0 + $0x148] sm:$0xff] }
  0x44   :  { %1469 = vmatprep.subr.bf16.mxu1 %v2510_v59  ;;  %v524_v60 = vpack.c.bf16 %v353_v49, %v352_v63  ;;  %v348_v63 = vld [vmem:[%s3972_s0 + $0x120] sm:$0xff]  ;;  %v349_v49 = vld [vmem:[%s3972_s0 + $0x128] sm:$0xff] }
  0x46   :  { %1181 = vmatpush1.bf16.msra.mxu0 %v509_v53  ;;  %v507_v53 = vpack.c.bf16 %v319_v61, %v318_v58  ;;  %v314_v58 = vld [vmem:[%s3972_s0 + $0x10] sm:$0xff]  ;;  %v315_v61 = vld [vmem:[%s3972_s0 + $0x18] sm:$0xff] }
  0x47   :  { %1470 = vmatpush1.bf16.msra.mxu1 %v525_v54  ;;  %1182 = vmatprep.subr.bf16.mxu0 %v2510_v59  ;;  %v523_v54 = vpack.c.bf16 %v351_v52, %v350_v62  ;;  %v346_v62 = vld [vmem:[%s3972_s0 + $0x110] sm:$0xff]  ;;  %v347_v52 = vld [vmem:[%s3972_s0 + $0x118] sm:$0xff] }
  0x48   :  { %1471 = vmatprep.subr.bf16.mxu1 %v2510_v59 }
  0x4a   :  { %1183 = vmatpush1.bf16.msra.mxu0 %v508_v57  ;;  %v506_v57 = vpack.c.bf16 %v317_v56, %v316_v55  ;;  %v312_v55 = vld [vmem:[%s3972_s0] sm:$0xff]  ;;  %v313_v56 = vld [vmem:[%s3972_s0 + $0x8] sm:$0xff] }
  0x4b   :  { %1472 = vmatpush1.bf16.msra.mxu1 %v524_v60  ;;  %1184 = vmatprep.subr.bf16.mxu0 %v2510_v59  ;;  %v522_v60 = vpack.c.bf16 %v349_v49, %v348_v63  ;;  %v344_v63 = vld [vmem:[%s3972_s0 + $0x100] sm:$0xff]  ;;  %v345_v49 = vld [vmem:[%s3972_s0 + $0x108] sm:$0xff] }
  0x4c   :  { %1473 = vmatprep.subr.bf16.mxu1 %v2510_v59 }
  0x4e   :  { %1185 = vmatpush1.bf16.msra.mxu0 %v507_v53  ;;  %v505_v53 = vpack.c.bf16 %v315_v61, %v314_v58  ;;  %v342_v58 = vld [vmem:[%s3972_s0 + $0xf0] sm:$0xff]  ;;  %v343_v61 = vld [vmem:[%s3972_s0 + $0xf8] sm:$0xff] }
  0x4f   :  { %1474 = vmatpush1.bf16.msra.mxu1 %v523_v54  ;;  %1186 = vmatprep.subr.bf16.mxu0 %v2510_v59  ;;  %v521_v54 = vpack.c.bf16 %v347_v52, %v346_v62  ;;  %v374_v62 = vld [vmem:[%s3972_s0 + $0x1f0] sm:$0xff]  ;;  %v375_v52 = vld [vmem:[%s3972_s0 + $0x1f8] sm:$0xff] }
  0x50   :  { %1475 = vmatprep.subr.bf16.mxu1 %v2510_v59 }
  0x52   :  { %1187 = vmatpush1.bf16.msra.mxu0 %v506_v57  ;;  %v504_v57 = vpack.c.bf16 %v313_v56, %v312_v55  ;;  %v340_v55 = vld [vmem:[%s3972_s0 + $0xe0] sm:$0xff]  ;;  %v341_v56 = vld [vmem:[%s3972_s0 + $0xe8] sm:$0xff] }
  0x53   :  { %1476 = vmatpush1.bf16.msra.mxu1 %v522_v60  ;;  %1188 = vmatprep.subr.bf16.mxu0 %v2510_v59  ;;  %v520_v60 = vpack.c.bf16 %v345_v49, %v344_v63  ;;  %v372_v63 = vld [vmem:[%s3972_s0 + $0x1e0] sm:$0xff]  ;;  %v373_v49 = vld [vmem:[%s3972_s0 + $0x1e8] sm:$0xff] }
  0x54   :  { %1477 = vmatprep.subr.bf16.mxu1 %v2510_v59 }
  0x56   :  { %1189 = vmatpush1.bf16.msra.mxu0 %v505_v53  ;;  %v519_v53 = vpack.c.bf16 %v343_v61, %v342_v58  ;;  %v338_v58 = vld [vmem:[%s3972_s0 + $0xd0] sm:$0xff]  ;;  %v339_v61 = vld [vmem:[%s3972_s0 + $0xd8] sm:$0xff] }
  0x57   :  { %1478 = vmatpush1.bf16.msra.mxu1 %v521_v54  ;;  %1190 = vmatprep.subr.bf16.mxu0 %v2510_v59  ;;  %v535_v54 = vpack.c.bf16 %v375_v52, %v374_v62  ;;  %v370_v62 = vld [vmem:[%s3972_s0 + $0x1d0] sm:$0xff]  ;;  %v371_v52 = vld [vmem:[%s3972_s0 + $0x1d8] sm:$0xff] }
  0x58   :  { %1479 = vmatprep.subr.bf16.mxu1 %v2510_v59 }
  0x5a   :  { %1191 = vmatpush1.bf16.msra.mxu0 %v504_v57  ;;  %v518_v57 = vpack.c.bf16 %v341_v56, %v340_v55  ;;  %v336_v55 = vld [vmem:[%s3972_s0 + $0xc0] sm:$0xff]  ;;  %v337_v56 = vld [vmem:[%s3972_s0 + $0xc8] sm:$0xff] }
  0x5b   :  { %1480 = vmatpush1.bf16.msra.mxu1 %v520_v60  ;;  %1192 = vmatprep.subr.bf16.mxu0 %v2510_v59  ;;  %v534_v60 = vpack.c.bf16 %v373_v49, %v372_v63  ;;  %v368_v63 = vld [vmem:[%s3972_s0 + $0x1c0] sm:$0xff]  ;;  %v369_v49 = vld [vmem:[%s3972_s0 + $0x1c8] sm:$0xff] }
  0x5c   :  { %1481 = vmatprep.subr.bf16.mxu1 %v2510_v59 }
  0x5e   :  { %1193 = vmatpush2.bf16.msra.mxu0 %v519_v53  ;;  %v517_v53 = vpack.c.bf16 %v339_v61, %v338_v58  ;;  %v334_v58 = vld [vmem:[%s3972_s0 + $0xb0] sm:$0xff]  ;;  %v335_v61 = vld [vmem:[%s3972_s0 + $0xb8] sm:$0xff] }
  0x5f   :  { %1482 = vmatpush2.bf16.msra.mxu1 %v535_v54  ;;  %1194 = vmatprep.subr.bf16.mxu0 %v2510_v59  ;;  %v533_v54 = vpack.c.bf16 %v371_v52, %v370_v62  ;;  %v366_v62 = vld [vmem:[%s3972_s0 + $0x1b0] sm:$0xff]  ;;  %v367_v52 = vld [vmem:[%s3972_s0 + $0x1b8] sm:$0xff] }
  0x60   :  { %1483 = vmatprep.subr.bf16.mxu1 %v2510_v59 }
  0x62   :  { %1195 = vmatpush2.bf16.msra.mxu0 %v518_v57  ;;  %v516_v57 = vpack.c.bf16 %v337_v56, %v336_v55  ;;  %v332_v55 = vld [vmem:[%s3972_s0 + $0xa0] sm:$0xff]  ;;  %v333_v56 = vld [vmem:[%s3972_s0 + $0xa8] sm:$0xff] }
  0x63   :  { %1484 = vmatpush2.bf16.msra.mxu1 %v534_v60  ;;  %1196 = vmatprep.subr.bf16.mxu0 %v2510_v59  ;;  %v532_v60 = vpack.c.bf16 %v369_v49, %v368_v63  ;;  %v364_v63 = vld [vmem:[%s3972_s0 + $0x1a0] sm:$0xff]  ;;  %v365_v49 = vld [vmem:[%s3972_s0 + $0x1a8] sm:$0xff] }
  0x64   :  { %1485 = vmatprep.subr.bf16.mxu1 %v2510_v59 }
  0x66   :  { %1197 = vmatpush2.bf16.msra.mxu0 %v517_v53  ;;  %v515_v53 = vpack.c.bf16 %v335_v61, %v334_v58  ;;  %v330_v58 = vld [vmem:[%s3972_s0 + $0x90] sm:$0xff]  ;;  %v331_v61 = vld [vmem:[%s3972_s0 + $0x98] sm:$0xff] }
  0x67   :  { %1486 = vmatpush2.bf16.msra.mxu1 %v533_v54  ;;  %1198 = vmatprep.subr.bf16.mxu0 %v2510_v59  ;;  %v531_v54 = vpack.c.bf16 %v367_v52, %v366_v62  ;;  %v362_v62 = vld [vmem:[%s3972_s0 + $0x190] sm:$0xff]  ;;  %v363_v52 = vld [vmem:[%s3972_s0 + $0x198] sm:$0xff] }
  0x68   :  { %1487 = vmatprep.subr.bf16.mxu1 %v2510_v59 }
  0x6a   :  { %1199 = vmatpush2.bf16.msra.mxu0 %v516_v57  ;;  %v514_v57 = vpack.c.bf16 %v333_v56, %v332_v55  ;;  %v328_v55 = vld [vmem:[%s3972_s0 + $0x80] sm:$0xff]  ;;  %v329_v56 = vld [vmem:[%s3972_s0 + $0x88] sm:$0xff] }
  0x6b   :  { %1488 = vmatpush2.bf16.msra.mxu1 %v532_v60  ;;  %1200 = vmatprep.subr.bf16.mxu0 %v2510_v59  ;;  %v530_v60 = vpack.c.bf16 %v365_v49, %v364_v63  ;;  %v360_v63 = vld [vmem:[%s3972_s0 + $0x180] sm:$0xff]  ;;  %v361_v49 = vld [vmem:[%s3972_s0 + $0x188] sm:$0xff]  ;;  %s2511_s0 = smov [#allocation3]  }
  0x6c   :  { %1489 = vmatprep.subr.bf16.mxu1 %v2510_v59  ;;  %s2207_s24 = sshll.u32 %s2511_s0, 4  ;;  %s2208_s24 = int_to_ptr.vmem [resolvable:$true] %s2207_s24 }
  0x6d   :  { %s2486_s25 = scalar_lea.vmem %s2208_s24, 8192  ;;  %p2491_p1 = scmp.lt.s32.totalorder %s2208_s24, %s2208_s24 }
  0x6e   :  { %1201 = vmatpush2.bf16.msra.mxu0 %v515_v53  ;;  %v513_v53 = vpack.c.bf16 %v331_v61, %v330_v58  ;;  %v2226_v58 = vcombine.low %v2532_v0, %v2542_v2  ;;  %v2228_v61 = vcombine.low %v2537_v1, %v2547_v3  ;;  %v2232_v0 = vcombine.low %v2557_v5, %v2567_v7  ;;  %p2487_p0 = scmp.ne.s32.totalorder %s2208_s24, %s2486_s25  ;;  %p2492_p2 = scmp.lt.s32.totalorder %s2486_s25, %s2486_s25 }
  0x6f   :  { %1490 = vmatpush2.bf16.msra.mxu1 %v531_v54  ;;  %1202 = vmatprep.subr.bf16.mxu0 %v2510_v59  ;;  %v529_v54 = vpack.c.bf16 %v363_v52, %v362_v62  ;;  %v2231_v62 = vcombine.high %v2552_v4, %v2562_v6  ;;  %v2233_v52 = vcombine.high %v2557_v5, %v2567_v7 }
  0x70   :  { %1491 = vmatprep.subr.bf16.mxu1 %v2510_v59  ;;  %v2235_v1 = vcombine.high %v2572_v8, %v2582_v10  ;;  %v2237_v2 = vcombine.high %v2577_v9, %v2587_v11  ;;  %v2234_v3 = vcombine.low %v2572_v8, %v2582_v10  ;;  %v2241_v5 = vcombine.high %v2597_v13, %v2607_v15  ;;  %p2493_p3 = por %p2492_p2, %p2491_p1 }
  0x71   :  { %v2240_v7 = vcombine.low %v2597_v13, %v2607_v15  ;;  %v2243_v8 = vcombine.high %v2612_v16, %v2622_v18  ;;  %v2242_v10 = vcombine.low %v2612_v16, %v2622_v18  ;;  %v2249_v13 = vcombine.high %v2637_v21, %v2647_v23 }
  0x72   :  { %1203 = vmatpush2.bf16.msra.mxu0 %v514_v57  ;;  %v512_v57 = vpack.c.bf16 %v329_v56, %v328_v55  ;;  %v2248_v15 = vcombine.low %v2637_v21, %v2647_v23  ;;  %v2251_v16 = vcombine.high %v2652_v24, %v2662_v26  ;;  %v2250_v18 = vcombine.low %v2652_v24, %v2662_v26  ;;  %p2494_p4 = pnand %p2493_p3, %p2487_p0 }
  0x73   :  { %1492 = vmatpush2.bf16.msra.mxu1 %v530_v60  ;;  %1204 = vmatprep.subr.bf16.mxu0 %v2510_v59  ;;  %v528_v60 = vpack.c.bf16 %v361_v49, %v360_v63  ;;  %v2257_v21 = vcombine.high %v2677_v29, %v2687_v31  ;;  %v2256_v23 = vcombine.low %v2677_v29, %v2687_v31 }
  0x74   :  { %1493 = vmatprep.subr.bf16.mxu1 %v2510_v59  ;;  %v2259_v24 = vcombine.high %v2692_v32, %v2702_v34  ;;  %v2258_v26 = vcombine.low %v2692_v32, %v2702_v34  ;;  %v2265_v29 = vcombine.high %v2717_v37, %v2727_v39  ;;  %v2264_v31 = vcombine.low %v2717_v37, %v2727_v39 }
  0x75   :  { %v2267_v32 = vcombine.high %v2732_v40, %v2742_v42  ;;  %v2266_v34 = vcombine.low %v2732_v40, %v2742_v42  ;;  %v2273_v37 = vcombine.high %v2757_v45, %v2767_v47  ;;  %v2272_v39 = vcombine.low %v2757_v45, %v2767_v47  ;;  %v4132_v45 = vld [vmem:[#allocation13_spill] sm:$0xff]  ;;  %v4133_v47 = vld [vmem:[#allocation11_spill] sm:$0xff] }
  0x76   :  { %1205 = vmatpush2.bf16.msra.mxu0 %v513_v53  ;;  %v2236_v53 = vcombine.low %v2577_v9, %v2587_v11  ;;  %v2245_v9 = vcombine.high %v2617_v17, %v2627_v19  ;;  %v2244_v11 = vcombine.low %v2617_v17, %v2627_v19  ;;  %v2253_v17 = vcombine.high %v2657_v25, %v2667_v27 }
  0x77   :  { %1494 = vmatpush2.bf16.msra.mxu1 %v529_v54  ;;  %1206 = vmatprep.subr.bf16.mxu0 %v2510_v59  ;;  %v2252_v19 = vcombine.low %v2657_v25, %v2667_v27  ;;  %v2261_v25 = vcombine.high %v2697_v33, %v2707_v35  ;;  %v2260_v27 = vcombine.low %v2697_v33, %v2707_v35 }
  0x78   :  { %1495 = vmatprep.subr.bf16.mxu1 %v2510_v59  ;;  %v2230_v59 = vcombine.low %v2552_v4, %v2562_v6  ;;  %v2239_v4 = vcombine.high %v2592_v12, %v2602_v14  ;;  %v2238_v6 = vcombine.low %v2592_v12, %v2602_v14  ;;  %v2247_v12 = vcombine.high %v2632_v20, %v2642_v22 }
  0x79   :  { %v2246_v14 = vcombine.low %v2632_v20, %v2642_v22  ;;  %v2255_v20 = vcombine.high %v2672_v28, %v2682_v30  ;;  %v2254_v22 = vcombine.low %v2672_v28, %v2682_v30  ;;  %v2263_v28 = vcombine.high %v2712_v36, %v2722_v38 }
  0x7a   :  { %1207 = vmatpush2.bf16.msra.mxu0 %v512_v57  ;;  %v2262_v30 = vcombine.low %v2712_v36, %v2722_v38  ;;  %v2269_v33 = vcombine.high %v2737_v41, %v2747_v43  ;;  %v2268_v35 = vcombine.low %v2737_v41, %v2747_v43  ;;  %v2271_v36 = vcombine.high %v2752_v44, %v2762_v46  ;;  %v4129_v41 = vld [vmem:[#allocation9_spill] sm:$0xff] }
  0x7b   :  { %1496 = vmatpush2.bf16.msra.mxu1 %v528_v60  ;;  %v2270_v38 = vcombine.low %v2752_v44, %v2762_v46  ;;  %v2275_v40 = vcombine.high %v2772_v48, %v2782_v50  ;;  %v2277_v42 = vcombine.high %v4129_v41, %v2787_v51  ;;  %v2274_v43 = vcombine.low %v2772_v48, %v2782_v50  ;;  %v4130_v44 = vld [vmem:[#allocation12_spill] sm:$0xff]  ;;  %v4131_v46 = vld [vmem:[#allocation10_spill] sm:$0xff]  ;;  %v4137_v60 = vld [vmem:[#allocation15_spill] sm:$0xff] }
  0x7c   :  { %v2276_v54 = vcombine.low %v4129_v41, %v2787_v51  ;;  %v2279_v55 = vcombine.high %v4131_v46, %v4130_v44  ;;  %v2281_v56 = vcombine.high %v4133_v47, %v4132_v45  ;;  %v2278_v63 = vcombine.low %v4131_v46, %v4130_v44  ;;  %v4134_v48 = vld [vmem:[#allocation16_spill] sm:$0xff]  ;;  %v4135_v50 = vld [vmem:[#allocation14_spill] sm:$0xff]  ;;  %v4136_v51 = vld [vmem:[#allocation17_spill] sm:$0xff] }
  0x7d   :  { %1209 = vmatmul.mubr.bf16.vlgmr.msra.gmra.mxu0 %v2226_v58  ;;  %v2280_v49 = vcombine.low %v4133_v47, %v4132_v45  ;;  %v2283_v57 = vcombine.high %v4135_v50, %v4134_v48  ;;  %v2285_v58 = vcombine.high %v4137_v60, %v4136_v51  ;;  %v4161_v41 = vld [vmem:[#allocation39_spill] sm:$0xff]  ;;  %v4162_v44 = vld [vmem:[#allocation44_spill] sm:$0xff]  ;;  %v4163_v46 = vld [vmem:[#allocation42_spill] sm:$0xff] }
  0x7e   :  { %1498 = vmatmul.mubr.bf16.vlgmr.msra.gmra.mxu1 %v2228_v61  ;;  %1216 = vmatprep.mubr.bf16.mxu0 %v2231_v62  ;;  %v2282_v61 = vcombine.low %v4135_v50, %v4134_v48  ;;  %v2284_v62 = vcombine.low %v4137_v60, %v4136_v51  ;;  %v4164_v45 = vld [vmem:[#allocation45_spill] sm:$0xff]  ;;  %v4165_v47 = vld [vmem:[#allocation43_spill] sm:$0xff]  ;;  %v4166_v48 = vld [vmem:[#allocation48_spill] sm:$0xff] }
  0x7f   :  { %1505 = vmatprep.mubr.bf16.mxu1 %v2233_v52  ;;  %v4138_v52 = vld [vmem:[#allocation20_spill] sm:$0xff]  ;;  %v4167_v50 = vld [vmem:[#allocation46_spill] sm:$0xff]  ;;  %v4168_v51 = vld [vmem:[#allocation49_spill] sm:$0xff] }
  0x80   :  { %v4169_v60 = vld [vmem:[#allocation47_spill] sm:$0xff] }
  0x85   :  { %1217 = vmatmul.mubr.bf16.gmra.mxu0 %v2230_v59  ;;  %v4139_v59 = vld [vmem:[#allocation18_spill] sm:$0xff] }
  0x86   :  { %1506 = vmatmul.mubr.bf16.gmra.mxu1 %v2232_v0  ;;  %1224 = vmatprep.mubr.bf16.mxu0 %v2235_v1  ;;  %v2287_v0 = vcombine.high %v4139_v59, %v4138_v52  ;;  %v4140_v1 = vld [vmem:[#allocation21_spill] sm:$0xff] }
  0x87   :  { %1513 = vmatprep.mubr.bf16.mxu1 %v2237_v2  ;;  %v4141_v2 = vld [vmem:[#allocation19_spill] sm:$0xff] }
  0x8d   :  { %1225 = vmatmul.mubr.bf16.gmra.mxu0 %v2234_v3  ;;  %v2289_v3 = vcombine.high %v4141_v2, %v4140_v1 }
  0x8e   :  { %1514 = vmatmul.mubr.bf16.gmra.mxu1 %v2236_v53  ;;  %1232 = vmatprep.mubr.bf16.mxu0 %v2239_v4  ;;  %v2286_v53 = vcombine.low %v4139_v59, %v4138_v52  ;;  %v2288_v4 = vcombine.low %v4141_v2, %v4140_v1  ;;  %v4170_v52 = vld [vmem:[#allocation52_spill] sm:$0xff]  ;;  %v4171_v59 = vld [vmem:[#allocation50_spill] sm:$0xff]  ;;  %v4172_v1 = vld [vmem:[#allocation53_spill] sm:$0xff] }
  0x8f   :  { %1521 = vmatprep.mubr.bf16.mxu1 %v2241_v5  ;;  %v4142_v5 = vld [vmem:[#allocation24_spill] sm:$0xff]  ;;  %v4173_v2 = vld [vmem:[#allocation51_spill] sm:$0xff] }
  0x95   :  { %1233 = vmatmul.mubr.bf16.gmra.mxu0 %v2238_v6  ;;  %v4143_v6 = vld [vmem:[#allocation22_spill] sm:$0xff] }
  0x96   :  { %1522 = vmatmul.mubr.bf16.gmra.mxu1 %v2240_v7  ;;  %1240 = vmatprep.mubr.bf16.mxu0 %v2243_v8  ;;  %v2291_v7 = vcombine.high %v4143_v6, %v4142_v5  ;;  %v4144_v8 = vld [vmem:[#allocation25_spill] sm:$0xff] }
  0x97   :  { %1529 = vmatprep.mubr.bf16.mxu1 %v2245_v9  ;;  %v4145_v9 = vld [vmem:[#allocation23_spill] sm:$0xff] }
  0x9d   :  { %1241 = vmatmul.mubr.bf16.gmra.mxu0 %v2242_v10  ;;  %v2293_v10 = vcombine.high %v4145_v9, %v4144_v8 }
  0x9e   :  { %1530 = vmatmul.mubr.bf16.gmra.mxu1 %v2244_v11  ;;  %1248 = vmatprep.mubr.bf16.mxu0 %v2247_v12  ;;  %v2290_v11 = vcombine.low %v4143_v6, %v4142_v5  ;;  %v2292_v12 = vcombine.low %v4145_v9, %v4144_v8  ;;  %v4174_v5 = vld [vmem:[#allocation56_spill] sm:$0xff]  ;;  %v4175_v6 = vld [vmem:[#allocation54_spill] sm:$0xff]  ;;  %v4176_v8 = vld [vmem:[#allocation57_spill] sm:$0xff] }
  0x9f   :  { %1537 = vmatprep.mubr.bf16.mxu1 %v2249_v13  ;;  %v4146_v13 = vld [vmem:[#allocation28_spill] sm:$0xff]  ;;  %v4177_v9 = vld [vmem:[#allocation55_spill] sm:$0xff] }
  0xa5   :  { %1249 = vmatmul.mubr.bf16.gmra.mxu0 %v2246_v14  ;;  %v4147_v14 = vld [vmem:[#allocation26_spill] sm:$0xff] }
  0xa6   :  { %1538 = vmatmul.mubr.bf16.gmra.mxu1 %v2248_v15  ;;  %1256 = vmatprep.mubr.bf16.mxu0 %v2251_v16  ;;  %v2295_v15 = vcombine.high %v4147_v14, %v4146_v13  ;;  %v4148_v16 = vld [vmem:[#allocation29_spill] sm:$0xff] }
  0xa7   :  { %1545 = vmatprep.mubr.bf16.mxu1 %v2253_v17  ;;  %v4149_v17 = vld [vmem:[#allocation27_spill] sm:$0xff] }
  0xad   :  { %1257 = vmatmul.mubr.bf16.gmra.mxu0 %v2250_v18  ;;  %v2297_v18 = vcombine.high %v4149_v17, %v4148_v16 }
  0xae   :  { %1546 = vmatmul.mubr.bf16.gmra.mxu1 %v2252_v19  ;;  %1264 = vmatprep.mubr.bf16.mxu0 %v2255_v20  ;;  %v2294_v19 = vcombine.low %v4147_v14, %v4146_v13  ;;  %v2296_v20 = vcombine.low %v4149_v17, %v4148_v16  ;;  %v4178_v13 = vld [vmem:[#allocation60_spill] sm:$0xff]  ;;  %v4179_v14 = vld [vmem:[#allocation58_spill] sm:$0xff]  ;;  %v4180_v16 = vld [vmem:[#allocation61_spill] sm:$0xff] }
  0xaf   :  { %1553 = vmatprep.mubr.bf16.mxu1 %v2257_v21  ;;  %v4150_v21 = vld [vmem:[#allocation32_spill] sm:$0xff]  ;;  %v4181_v17 = vld [vmem:[#allocation59_spill] sm:$0xff] }
  0xb5   :  { %1265 = vmatmul.mubr.bf16.gmra.mxu0 %v2254_v22  ;;  %v4151_v22 = vld [vmem:[#allocation30_spill] sm:$0xff] }
  0xb6   :  { %1554 = vmatmul.mubr.bf16.gmra.mxu1 %v2256_v23  ;;  %1272 = vmatprep.mubr.bf16.mxu0 %v2259_v24  ;;  %v2299_v23 = vcombine.high %v4151_v22, %v4150_v21  ;;  %v4152_v24 = vld [vmem:[#allocation33_spill] sm:$0xff] }
  0xb7   :  { %1561 = vmatprep.mubr.bf16.mxu1 %v2261_v25  ;;  %v4153_v25 = vld [vmem:[#allocation31_spill] sm:$0xff] }
  0xbd   :  { %1273 = vmatmul.mubr.bf16.gmra.mxu0 %v2258_v26  ;;  %v2301_v26 = vcombine.high %v4153_v25, %v4152_v24 }
  0xbe   :  { %1562 = vmatmul.mubr.bf16.gmra.mxu1 %v2260_v27  ;;  %1280 = vmatprep.mubr.bf16.mxu0 %v2263_v28  ;;  %v2298_v27 = vcombine.low %v4151_v22, %v4150_v21  ;;  %v2300_v28 = vcombine.low %v4153_v25, %v4152_v24 }
  0xbf   :  { %1569 = vmatprep.mubr.bf16.mxu1 %v2265_v29  ;;  %v4154_v29 = vld [vmem:[#allocation36_spill] sm:$0xff] }
  0xc5   :  { %1281 = vmatmul.mubr.bf16.gmra.mxu0 %v2262_v30  ;;  %v4155_v30 = vld [vmem:[#allocation34_spill] sm:$0xff] }
  0xc6   :  { %1570 = vmatmul.mubr.bf16.gmra.mxu1 %v2264_v31  ;;  %1288 = vmatprep.mubr.bf16.mxu0 %v2267_v32  ;;  %v2303_v31 = vcombine.high %v4155_v30, %v4154_v29  ;;  %v4156_v32 = vld [vmem:[#allocation37_spill] sm:$0xff] }
  0xc7   :  { %1577 = vmatprep.mubr.bf16.mxu1 %v2269_v33  ;;  %v4157_v33 = vld [vmem:[#allocation35_spill] sm:$0xff] }
  0xcd   :  { %1289 = vmatmul.mubr.bf16.gmra.mxu0 %v2266_v34  ;;  %v2305_v34 = vcombine.high %v4157_v33, %v4156_v32 }
  0xce   :  { %1578 = vmatmul.mubr.bf16.gmra.mxu1 %v2268_v35  ;;  %1296 = vmatprep.mubr.bf16.mxu0 %v2271_v36  ;;  %v2302_v35 = vcombine.low %v4155_v30, %v4154_v29  ;;  %v2304_v36 = vcombine.low %v4157_v33, %v4156_v32  ;;  %v4182_v29 = vld [vmem:[#allocation64_spill] sm:$0xff]  ;;  %v4183_v30 = vld [vmem:[#allocation62_spill] sm:$0xff] }
  0xcf   :  { %1585 = vmatprep.mubr.bf16.mxu1 %v2273_v37  ;;  %v4158_v37 = vld [vmem:[#allocation40_spill] sm:$0xff] }
  0xd5   :  { %1297 = vmatmul.mubr.bf16.gmra.mxu0 %v2270_v38  ;;  %v4159_v38 = vld [vmem:[#allocation38_spill] sm:$0xff] }
  0xd6   :  { %1586 = vmatmul.mubr.bf16.gmra.mxu1 %v2272_v39  ;;  %1304 = vmatprep.mubr.bf16.mxu0 %v2275_v40  ;;  %v2307_v39 = vcombine.high %v4159_v38, %v4158_v37  ;;  %v4160_v40 = vld [vmem:[#allocation41_spill] sm:$0xff] }
  0xd7   :  { %1593 = vmatprep.mubr.bf16.mxu1 %v2277_v42  ;;  %v2309_v42 = vcombine.high %v4161_v41, %v4160_v40 }
  0xdd   :  { %1305 = vmatmul.mubr.bf16.gmra.mxu0 %v2274_v43  ;;  %v2306_v43 = vcombine.low %v4159_v38, %v4158_v37 }
  0xde   :  { %1594 = vmatmul.mubr.bf16.gmra.mxu1 %v2276_v54  ;;  %1312 = vmatprep.mubr.bf16.mxu0 %v2279_v55  ;;  %v2308_v54 = vcombine.low %v4161_v41, %v4160_v40  ;;  %v2311_v55 = vcombine.high %v4163_v46, %v4162_v44 }
  0xdf   :  { %1601 = vmatprep.mubr.bf16.mxu1 %v2281_v56  ;;  %v2313_v56 = vcombine.high %v4165_v47, %v4164_v45 }
  0xe5   :  { %1313 = vmatmul.mubr.bf16.gmra.mxu0 %v2278_v63  ;;  %v2310_v63 = vcombine.low %v4163_v46, %v4162_v44  ;;  %v2330_v46 = vcombine.low %v4183_v30, %v4182_v29 }
  0xe6   :  { %1602 = vmatmul.mubr.bf16.gmra.mxu1 %v2280_v49  ;;  %1320 = vmatprep.mubr.bf16.mxu0 %v2283_v57  ;;  %v2312_v49 = vcombine.low %v4165_v47, %v4164_v45  ;;  %v2315_v57 = vcombine.high %v4167_v50, %v4166_v48  ;;  %v4186_v47 = vld [vmem:[#allocation68_spill] sm:$0xff] }
  0xe7   :  { %1609 = vmatprep.mubr.bf16.mxu1 %v2285_v58  ;;  %v2317_v58 = vcombine.high %v4169_v60, %v4168_v51 }
  0xed   :  { %1321 = vmatmul.mubr.bf16.gmra.mxu0 %v2282_v61  ;;  %v2314_v61 = vcombine.low %v4167_v50, %v4166_v48  ;;  %v4188_v50 = vld [vmem:[#allocation69_spill] sm:$0xff] }
  0xee   :  { %1610 = vmatmul.mubr.bf16.gmra.mxu1 %v2284_v62  ;;  %1328 = vmatprep.mubr.bf16.mxu0 %v2287_v0  ;;  %v2316_v62 = vcombine.low %v4169_v60, %v4168_v51  ;;  %v2319_v0 = vcombine.high %v4171_v59, %v4170_v52 }
  0xef   :  { %1617 = vmatprep.mubr.bf16.mxu1 %v2289_v3  ;;  %v2321_v3 = vcombine.high %v4173_v2, %v4172_v1 }
  0xf5   :  { %1329 = vmatmul.mubr.bf16.gmra.mxu0 %v2286_v53  ;;  %v2318_v53 = vcombine.low %v4171_v59, %v4170_v52 }
  0xf6   :  { %1618 = vmatmul.mubr.bf16.gmra.mxu1 %v2288_v4  ;;  %1336 = vmatprep.mubr.bf16.mxu0 %v2291_v7  ;;  %v2320_v4 = vcombine.low %v4173_v2, %v4172_v1  ;;  %v2323_v7 = vcombine.high %v4175_v6, %v4174_v5 }
  0xf7   :  { %1625 = vmatprep.mubr.bf16.mxu1 %v2293_v10  ;;  %v2325_v10 = vcombine.high %v4177_v9, %v4176_v8 }
  0xfd   :  { %1337 = vmatmul.mubr.bf16.gmra.mxu0 %v2290_v11  ;;  %v2322_v11 = vcombine.low %v4175_v6, %v4174_v5  ;;  %v4190_v5 = vld [vmem:[#allocation72_spill] sm:$0xff]  ;;  %v4191_v6 = vld [vmem:[#allocation70_spill] sm:$0xff] }
  0xfe   :  { %1626 = vmatmul.mubr.bf16.gmra.mxu1 %v2292_v12  ;;  %1344 = vmatprep.mubr.bf16.mxu0 %v2295_v15  ;;  %v2324_v12 = vcombine.low %v4177_v9, %v4176_v8  ;;  %v2327_v15 = vcombine.high %v4179_v14, %v4178_v13 }
  0xff   :  { %1633 = vmatprep.mubr.bf16.mxu1 %v2297_v18  ;;  %v2329_v18 = vcombine.high %v4181_v17, %v4180_v16 }
 0x105   :  { %1345 = vmatmul.mubr.bf16.gmra.mxu0 %v2294_v19 }
 0x106   :  { %1634 = vmatmul.mubr.bf16.gmra.mxu1 %v2296_v20  ;;  %1352 = vmatprep.mubr.bf16.mxu0 %v2299_v23 }
 0x107   :  { %1641 = vmatprep.mubr.bf16.mxu1 %v2301_v26  ;;  %v2326_v26 = vcombine.low %v4179_v14, %v4178_v13 }
 0x10d   :  { %1353 = vmatmul.mubr.bf16.gmra.mxu0 %v2298_v27 }
 0x10e   :  { %1642 = vmatmul.mubr.bf16.gmra.mxu1 %v2300_v28  ;;  %1360 = vmatprep.mubr.bf16.mxu0 %v2303_v31  ;;  %v2328_v28 = vcombine.low %v4181_v17, %v4180_v16  ;;  %v2331_v31 = vcombine.high %v4183_v30, %v4182_v29 }
 0x10f   :  { %1649 = vmatprep.mubr.bf16.mxu1 %v2305_v34  ;;  %v4184_v34 = vld [vmem:[#allocation65_spill] sm:$0xff] }
 0x115   :  { %1361 = vmatmul.mubr.bf16.gmra.mxu0 %v2302_v35  ;;  %v4185_v35 = vld [vmem:[#allocation63_spill] sm:$0xff] }
 0x116   :  { %1650 = vmatmul.mubr.bf16.gmra.mxu1 %v2304_v36  ;;  %1368 = vmatprep.mubr.bf16.mxu0 %v2307_v39  ;;  %v2333_v36 = vcombine.high %v4185_v35, %v4184_v34  ;;  %v2332_v45 = vcombine.low %v4185_v35, %v4184_v34 }
 0x117   :  { %1657 = vmatprep.mubr.bf16.mxu1 %v2309_v42 }
 0x11d   :  { %1369 = vmatmul.mubr.bf16.gmra.mxu0 %v2306_v43 }
 0x11e   :  { %1658 = vmatmul.mubr.bf16.gmra.mxu1 %v2308_v54  ;;  %1376 = vmatprep.mubr.bf16.mxu0 %v2311_v55 }
 0x11f   :  { %1665 = vmatprep.mubr.bf16.mxu1 %v2313_v56  ;;  %v4187_v56 = vld [vmem:[#allocation66_spill] sm:$0xff] }
 0x125   :  { %1377 = vmatmul.mubr.bf16.gmra.mxu0 %v2310_v63  ;;  %v2335_v63 = vcombine.high %v4187_v56, %v4186_v47 }
 0x126   :  { %1666 = vmatmul.mubr.bf16.gmra.mxu1 %v2312_v49  ;;  %1384 = vmatprep.mubr.bf16.mxu0 %v2315_v57  ;;  %v4189_v57 = vld [vmem:[#allocation67_spill] sm:$0xff] }
 0x127   :  { %1673 = vmatprep.mubr.bf16.mxu1 %v2317_v58  ;;  %v2337_v51 = vcombine.high %v4189_v57, %v4188_v50 }
 0x12d   :  { %1385 = vmatmul.mubr.bf16.gmra.mxu0 %v2314_v61 }
 0x12e   :  { %1674 = vmatmul.mubr.bf16.gmra.mxu1 %v2316_v62  ;;  %1392 = vmatprep.mubr.bf16.mxu0 %v2319_v0 }
 0x12f   :  { %1681 = vmatprep.mubr.bf16.mxu1 %v2321_v3  ;;  %v2334_v3 = vcombine.low %v4187_v56, %v4186_v47  ;;  %v4199_v47 = vld [vmem:[#allocation78_spill] sm:$0xff] }
 0x135   :  { %1393 = vmatmul.mubr.bf16.gmra.mxu0 %v2318_v53 }
 0x136   :  { %1682 = vmatmul.mubr.bf16.gmra.mxu1 %v2320_v4  ;;  %1400 = vmatprep.mubr.bf16.mxu0 %v2323_v7  ;;  %v2336_v4 = vcombine.low %v4189_v57, %v4188_v50  ;;  %v2339_v7 = vcombine.high %v4191_v6, %v4190_v5  ;;  %v4200_v50 = vld [vmem:[#allocation81_spill] sm:$0xff]  ;;  %v4201_v57 = vld [vmem:[#allocation79_spill] sm:$0xff] }
 0x137   :  { %1689 = vmatprep.mubr.bf16.mxu1 %v2325_v10  ;;  %v4192_v10 = vld [vmem:[#allocation73_spill] sm:$0xff] }
 0x13d   :  { %v1210_v19 = vpop.f32.mrf.mxu0  ;;  %1401 = vmatmul.mubr.bf16.gmra.mxu0 %v2322_v11  ;;  %v4193_v11 = vld [vmem:[#allocation71_spill] sm:$0xff] }
 0x13e   :  { %v1499_v20 = vpop.f32.mrf.mxu1  ;;  %1690 = vmatmul.mubr.bf16.gmra.mxu1 %v2324_v12  ;;  %1408 = vmatprep.mubr.bf16.mxu0 %v2327_v15  ;;  %v2341_v12 = vcombine.high %v4193_v11, %v4192_v10 }
 0x13f   :  { %v3597_v21 = vadd.f32 %v1499_v20, %v1210_v19  ;;  %v1212_v22 = vpop.f32.mrf.mxu0  ;;  %1697 = vmatprep.mubr.bf16.mxu1 %v2329_v18 }
 0x140   :  { %v1501_v23 = vpop.f32.mrf.mxu1 }
 0x141   :  { %v1213_v24 = vpop.f32.mrf.mxu0  ;;  %v1754_v25 = vmul.f32 %v3597_v21, %v3597_v21  ;;  %v2338_v23 = vcombine.low %v4191_v6, %v4190_v5  ;;  %v2348_v5 = vcombine.low %v4201_v57, %v4200_v50  ;;  %v4202_v6 = vld [vmem:[#allocation84_spill] sm:$0xff] }
 0x142   :  { %v1502_v27 = vpop.f32.mrf.mxu1 }
 0x143   :  { %v3607_v32 = vadd.f32 %v1502_v27, %v1213_v24  ;;  %1818 = vadd.xlane.f32.xlu0 %v1754_v25  ;;  %v1215_v33 = vpop.f32.mrf.mxu0  ;;  %v2340_v25 = vcombine.low %v4193_v11, %v4192_v10  ;;  %v4195_v27 = vld [vmem:[#allocation74_spill] sm:$0xff] }
 0x144   :  { %v1504_v37 = vpop.f32.mrf.mxu1  ;;  %v4197_v33 = vld [vmem:[#allocation75_spill] sm:$0xff] }
 0x145   :  { %v1218_v38 = vpop.f32.mrf.mxu0  ;;  %1409 = vmatmul.mubr.bf16.gmra.mxu0 %v2326_v26  ;;  %v1755_v39 = vmul.f32 %v3607_v32, %v3607_v32  ;;  %v4194_v26 = vld [vmem:[#allocation76_spill] sm:$0xff] }
 0x146   :  { %v1507_v40 = vpop.f32.mrf.mxu1  ;;  %1698 = vmatmul.mubr.bf16.gmra.mxu1 %v2328_v28  ;;  %1416 = vmatprep.mubr.bf16.mxu0 %v2331_v31  ;;  %v2343_v28 = vcombine.high %v4195_v27, %v4194_v26  ;;  %v4196_v31 = vld [vmem:[#allocation77_spill] sm:$0xff] }
 0x147   :  { %v3613_v41 = vadd.f32 %v1507_v40, %v1218_v38  ;;  %1820 = vadd.xlane.f32.xlu0 %v1755_v39  ;;  %v1220_v42 = vpop.f32.mrf.mxu0  ;;  %1705 = vmatprep.mubr.bf16.mxu1 %v2333_v36  ;;  %v2345_v34 = vcombine.high %v4197_v33, %v4196_v31 }
 0x148   :  { %v1509_v43 = vpop.f32.mrf.mxu1 }
 0x149   :  { %v1221_v54 = vpop.f32.mrf.mxu0  ;;  %v1756_v44 = vmul.f32 %v3613_v41, %v3613_v41 }
 0x14a   :  { %v1510_v55 = vpop.f32.mrf.mxu1 }
 0x14b   :  { %v3623_v49 = vadd.f32 %v1510_v55, %v1221_v54  ;;  %1822 = vadd.xlane.f32.xlu1 %v1756_v44  ;;  %v1223_v48 = vpop.f32.mrf.mxu0  ;;  %v2342_v44 = vcombine.low %v4195_v27, %v4194_v26  ;;  %v2344_v55 = vcombine.low %v4197_v33, %v4196_v31 }
 0x14c   :  { %v1512_v60 = vpop.f32.mrf.mxu1 }
 0x14d   :  { %v1226_v58 = vpop.f32.mrf.mxu0  ;;  %1417 = vmatmul.mubr.bf16.gmra.mxu0 %v2330_v46  ;;  %v1757_v61 = vmul.f32 %v3623_v49, %v3623_v49 }
 0x14e   :  { %v1515_v62 = vpop.f32.mrf.mxu1  ;;  %1706 = vmatmul.mubr.bf16.gmra.mxu1 %v2332_v45  ;;  %1424 = vmatprep.mubr.bf16.mxu0 %v2335_v63  ;;  %v4198_v45 = vld [vmem:[#allocation80_spill] sm:$0xff] }
 0x14f   :  { %v3629_v52 = vadd.f32 %v1515_v62, %v1226_v58  ;;  %1824 = vadd.xlane.f32.xlu1 %v1757_v61  ;;  %v1228_v59 = vpop.f32.mrf.mxu0  ;;  %1713 = vmatprep.mubr.bf16.mxu1 %v2337_v51  ;;  %v2347_v56 = vcombine.high %v4199_v47, %v4198_v45  ;;  %v2349_v51 = vcombine.high %v4201_v57, %v4200_v50 }
 0x150   :  { %v1517_v0 = vpop.f32.mrf.mxu1 }
 0x151   :  { %v1229_v1 = vpop.f32.mrf.mxu0  ;;  %v1758_v2 = vmul.f32 %v3629_v52, %v3629_v52 }
 0x152   :  { %v1518_v53 = vpop.f32.mrf.mxu1 }
 0x153   :  { %v3639_v8 = vadd.f32 %v1518_v53, %v1229_v1  ;;  %1826 = vadd.xlane.f32.xlu0 %v1758_v2  ;;  %v1231_v9 = vpop.f32.mrf.mxu0  ;;  %v2346_v53 = vcombine.low %v4199_v47, %v4198_v45 }
 0x154   :  { %v1520_v13 = vpop.f32.mrf.mxu1 }
 0x155   :  { %v1234_v14 = vpop.f32.mrf.mxu0  ;;  %1425 = vmatmul.mubr.bf16.gmra.mxu0 %v2334_v3  ;;  %v1759_v15 = vmul.f32 %v3639_v8, %v3639_v8  ;;  %v4205_v13 = vld [vmem:[#allocation83_spill] sm:$0xff] }
 0x156   :  { %v1523_v16 = vpop.f32.mrf.mxu1  ;;  %1714 = vmatmul.mubr.bf16.gmra.mxu1 %v2336_v4  ;;  %1432 = vmatprep.mubr.bf16.mxu0 %v2339_v7  ;;  %v4203_v7 = vld [vmem:[#allocation82_spill] sm:$0xff] }
 0x157   :  { %v3645_v17 = vadd.f32 %v1523_v16, %v1234_v14  ;;  %1828 = vadd.xlane.f32.xlu1 %v1759_v15  ;;  %v1236_v18 = vpop.f32.mrf.mxu0  ;;  %1721 = vmatprep.mubr.bf16.mxu1 %v2341_v12  ;;  %v2351_v9 = vcombine.high %v4203_v7, %v4202_v6  ;;  %v4204_v12 = vld [vmem:[#allocation85_spill] sm:$0xff]  ;;  %v2350_v26 = vcombine.low %v4203_v7, %v4202_v6 }
 0x158   :  { %v1525_v19 = vpop.f32.mrf.mxu1  ;;  %v2353_v14 = vcombine.high %v4205_v13, %v4204_v12 }
 0x159   :  { %v1237_v20 = vpop.f32.mrf.mxu0  ;;  %v1760_v22 = vmul.f32 %v3645_v17, %v3645_v17 }
 0x15a   :  { %v1526_v24 = vpop.f32.mrf.mxu1 }
 0x15b   :  { %v3655_v29 = vadd.f32 %v1526_v24, %v1237_v20  ;;  %1830 = vadd.xlane.f32.xlu0 %v1760_v22  ;;  %v1239_v30 = vpop.f32.mrf.mxu0 }
 0x15c   :  { %v1528_v35 = vpop.f32.mrf.mxu1 }
 0x15d   :  { %v1242_v36 = vpop.f32.mrf.mxu0  ;;  %1433 = vmatmul.mubr.bf16.gmra.mxu0 %v2338_v23  ;;  %v1761_v37 = vmul.f32 %v3655_v29, %v3655_v29 }
 0x15e   :  { %v1531_v38 = vpop.f32.mrf.mxu1  ;;  %1722 = vmatmul.mubr.bf16.gmra.mxu1 %v2340_v25  ;;  %1440 = vmatprep.mubr.bf16.mxu0 %v2343_v28  ;;  %v2352_v28 = vcombine.low %v4205_v13, %v4204_v12 }
 0x15f   :  { %v3661_v39 = vadd.f32 %v1531_v38, %v1242_v36  ;;  %1832 = vadd.xlane.f32.xlu1 %v1761_v37  ;;  %v1244_v40 = vpop.f32.mrf.mxu0  ;;  %1729 = vmatprep.mubr.bf16.mxu1 %v2345_v34 }
 0x160   :  { %v1533_v42 = vpop.f32.mrf.mxu1 }
 0x161   :  { %v1245_v43 = vpop.f32.mrf.mxu0  ;;  %v1762_v54 = vmul.f32 %v3661_v39, %v3661_v39 }
 0x162   :  { %v1534_v46 = vpop.f32.mrf.mxu1 }
 0x163   :  { %v3671_v63 = vadd.f32 %v1534_v46, %v1245_v43  ;;  %1834 = vadd.xlane.f32.xlu0 %v1762_v54  ;;  %v1247_v48 = vpop.f32.mrf.mxu0 }
 0x164   :  { %v1536_v60 = vpop.f32.mrf.mxu1 }
 0x165   :  { %v1250_v58 = vpop.f32.mrf.mxu0  ;;  %1441 = vmatmul.mubr.bf16.gmra.mxu0 %v2342_v44  ;;  %v1763_v61 = vmul.f32 %v3671_v63, %v3671_v63 }
 0x166   :  { %v1539_v62 = vpop.f32.mrf.mxu1  ;;  %1730 = vmatmul.mubr.bf16.gmra.mxu1 %v2344_v55  ;;  %1448 = vmatprep.mubr.bf16.mxu0 %v2347_v56 }
 0x167   :  { %v3677_v59 = vadd.f32 %v1539_v62, %v1250_v58  ;;  %1836 = vadd.xlane.f32.xlu1 %v1763_v61  ;;  %v1252_v0 = vpop.f32.mrf.mxu0  ;;  %1737 = vmatprep.mubr.bf16.mxu1 %v2349_v51 }
 0x168   :  { %v1541_v1 = vpop.f32.mrf.mxu1 }
 0x169   :  { %v1253_v2 = vpop.f32.mrf.mxu0  ;;  %v1764_v3 = vmul.f32 %v3677_v59, %v3677_v59 }
 0x16a   :  { %v1542_v4 = vpop.f32.mrf.mxu1 }
 0x16b   :  { %v3687_v10 = vadd.f32 %v1542_v4, %v1253_v2  ;;  %1838 = vadd.xlane.f32.xlu0 %v1764_v3  ;;  %v1255_v11 = vpop.f32.mrf.mxu0 }
 0x16c   :  { %v1544_v15 = vpop.f32.mrf.mxu1 }
 0x16d   :  { %v1258_v16 = vpop.f32.mrf.mxu0  ;;  %1449 = vmatmul.mubr.bf16.gmra.mxu0 %v2346_v53  ;;  %v1765_v18 = vmul.f32 %v3687_v10, %v3687_v10 }
 0x16e   :  { %v1547_v19 = vpop.f32.mrf.mxu1  ;;  %1738 = vmatmul.mubr.bf16.gmra.mxu1 %v2348_v5  ;;  %1456 = vmatprep.mubr.bf16.mxu0 %v2351_v9 }
 0x16f   :  { %v3693_v20 = vadd.f32 %v1547_v19, %v1258_v16  ;;  %1840 = vadd.xlane.f32.xlu1 %v1765_v18  ;;  %v1260_v22 = vpop.f32.mrf.mxu0  ;;  %1745 = vmatprep.mubr.bf16.mxu1 %v2353_v14 }
 0x170   :  { %v1549_v23 = vpop.f32.mrf.mxu1 }
 0x171   :  { %v1261_v24 = vpop.f32.mrf.mxu0  ;;  %v1766_v25 = vmul.f32 %v3693_v20, %v3693_v20 }
 0x172   :  { %v1550_v27 = vpop.f32.mrf.mxu1 }
 0x173   :  { %v3701_v30 = vadd.f32 %v1550_v27, %v1261_v24  ;;  %1842 = vadd.xlane.f32.xlu0 %v1766_v25  ;;  %v1263_v31 = vpop.f32.mrf.mxu0 }
 0x174   :  { %v1552_v33 = vpop.f32.mrf.mxu1 }
 0x175   :  { %v1266_v34 = vpop.f32.mrf.mxu0  ;;  %1457 = vmatmul.mubr.bf16.gmra.mxu0 %v2350_v26  ;;  %v1767_v35 = vmul.f32 %v3701_v30, %v3701_v30 }
 0x176   :  { %v1555_v36 = vpop.f32.mrf.mxu1  ;;  %1746 = vmatmul.mubr.bf16.gmra.mxu1 %v2352_v28 }
 0x177   :  { %v3705_v37 = vadd.f32 %v1555_v36, %v1266_v34  ;;  %1844 = vadd.xlane.f32.xlu1 %v1767_v35  ;;  %v1268_v38 = vpop.f32.mrf.mxu0 }
 0x178   :  { %v1557_v40 = vpop.f32.mrf.mxu1 }
 0x179   :  { %v1269_v42 = vpop.f32.mrf.mxu0  ;;  %v1768_v43 = vmul.f32 %v3705_v37, %v3705_v37 }
 0x17a   :  { %v1558_v54 = vpop.f32.mrf.mxu1 }
 0x17b   :  { %v3709_v44 = vadd.f32 %v1558_v54, %v1269_v42  ;;  %1846 = vadd.xlane.f32.xlu0 %v1768_v43  ;;  %v1271_v46 = vpop.f32.mrf.mxu0 }
 0x17c   :  { %v1560_v55 = vpop.f32.mrf.mxu1 }
 0x17d   :  { %v1274_v45 = vpop.f32.mrf.mxu0  ;;  %v1769_v47 = vmul.f32 %v3709_v44, %v3709_v44 }
 0x17e   :  { %v1563_v56 = vpop.f32.mrf.mxu1 }
 0x17f   :  { %v3713_v48 = vadd.f32 %v1563_v56, %v1274_v45  ;;  %1848 = vadd.xlane.f32.xlu1 %v1769_v47  ;;  %v1276_v50 = vpop.f32.mrf.mxu0 }
 0x180   :  { %v1565_v57 = vpop.f32.mrf.mxu1 }
 0x181   :  { %v1277_v51 = vpop.f32.mrf.mxu0  ;;  %v1770_v60 = vmul.f32 %v3713_v48, %v3713_v48 }
 0x182   :  { %v1566_v58 = vpop.f32.mrf.mxu1 }
 0x183   :  { %v3717_v61 = vadd.f32 %v1566_v58, %v1277_v51  ;;  %1850 = vadd.xlane.f32.xlu0 %v1770_v60  ;;  %v1279_v62 = vpop.f32.mrf.mxu0 }
 0x184   :  { %v1568_v0 = vpop.f32.mrf.mxu1 }
 0x185   :  { %v1282_v1 = vpop.f32.mrf.mxu0  ;;  %v1771_v2 = vmul.f32 %v3717_v61, %v3717_v61 }
 0x186   :  { %v1571_v3 = vpop.f32.mrf.mxu1 }
 0x187   :  { %v3721_v53 = vadd.f32 %v1571_v3, %v1282_v1  ;;  %1852 = vadd.xlane.f32.xlu1 %v1771_v2  ;;  %v1284_v4 = vpop.f32.mrf.mxu0 }
 0x188   :  { %v1573_v5 = vpop.f32.mrf.mxu1 }
 0x189   :  { %v1285_v6 = vpop.f32.mrf.mxu0  ;;  %v1772_v7 = vmul.f32 %v3721_v53, %v3721_v53 }
 0x18a   :  { %v1574_v9 = vpop.f32.mrf.mxu1 }
 0x18b   :  { %v3725_v11 = vadd.f32 %v1574_v9, %v1285_v6  ;;  %1854 = vadd.xlane.f32.xlu0 %v1772_v7  ;;  %v1287_v12 = vpop.f32.mrf.mxu0 }
 0x18c   :  { %v1576_v13 = vpop.f32.mrf.mxu1 }
 0x18d   :  { %v1290_v14 = vpop.f32.mrf.mxu0  ;;  %v1773_v15 = vmul.f32 %v3725_v11, %v3725_v11 }
 0x18e   :  { %v1579_v16 = vpop.f32.mrf.mxu1 }
 0x18f   :  { %v3729_v18 = vadd.f32 %v1579_v16, %v1290_v14  ;;  %1856 = vadd.xlane.f32.xlu1 %v1773_v15  ;;  %v1292_v19 = vpop.f32.mrf.mxu0 }
 0x190   :  { %v1581_v22 = vpop.f32.mrf.mxu1 }
 0x191   :  { %v1293_v23 = vpop.f32.mrf.mxu0  ;;  %v1774_v24 = vmul.f32 %v3729_v18, %v3729_v18 }
 0x192   :  { %v1582_v25 = vpop.f32.mrf.mxu1 }
 0x193   :  { %v3733_v26 = vadd.f32 %v1582_v25, %v1293_v23  ;;  %1858 = vadd.xlane.f32.xlu0 %v1774_v24  ;;  %v1295_v27 = vpop.f32.mrf.mxu0 }
 0x194   :  { %v1584_v28 = vpop.f32.mrf.mxu1 }
 0x195   :  { %v1298_v31 = vpop.f32.mrf.mxu0  ;;  %v1775_v33 = vmul.f32 %v3733_v26, %v3733_v26 }
 0x196   :  { %v1587_v34 = vpop.f32.mrf.mxu1 }
 0x197   :  { %v3737_v35 = vadd.f32 %v1587_v34, %v1298_v31  ;;  %1860 = vadd.xlane.f32.xlu1 %v1775_v33  ;;  %v1300_v36 = vpop.f32.mrf.mxu0 }
 0x198   :  { %v1589_v38 = vpop.f32.mrf.mxu1 }
 0x199   :  { %v1301_v40 = vpop.f32.mrf.mxu0  ;;  %v1776_v42 = vmul.f32 %v3737_v35, %v3737_v35 }
 0x19a   :  { %v1590_v43 = vpop.f32.mrf.mxu1 }
 0x19b   :  { %v3741_v54 = vadd.f32 %v1590_v43, %v1301_v40  ;;  %1862 = vadd.xlane.f32.xlu0 %v1776_v42  ;;  %v1303_v46 = vpop.f32.mrf.mxu0 }
 0x19c   :  { %v1592_v55 = vpop.f32.mrf.mxu1 }
 0x19d   :  { %v1306_v45 = vpop.f32.mrf.mxu0  ;;  %v1777_v47 = vmul.f32 %v3741_v54, %v3741_v54 }
 0x19e   :  { %v1595_v56 = vpop.f32.mrf.mxu1 }
 0x19f   :  { %v3745_v50 = vadd.f32 %v1595_v56, %v1306_v45  ;;  %1864 = vadd.xlane.f32.xlu1 %v1777_v47  ;;  %v1308_v57 = vpop.f32.mrf.mxu0 }
 0x1a0   :  { %v1597_v51 = vpop.f32.mrf.mxu1 }
 0x1a1   :  { %v1309_v60 = vpop.f32.mrf.mxu0  ;;  %v1778_v58 = vmul.f32 %v3745_v50, %v3745_v50 }
 0x1a2   :  { %v1598_v62 = vpop.f32.mrf.mxu1 }
 0x1a3   :  { %v3749_v0 = vadd.f32 %v1598_v62, %v1309_v60  ;;  %1866 = vadd.xlane.f32.xlu0 %v1778_v58  ;;  %v1311_v1 = vpop.f32.mrf.mxu0 }
 0x1a4   :  { %v1600_v2 = vpop.f32.mrf.mxu1 }
 0x1a5   :  { %v1314_v3 = vpop.f32.mrf.mxu0  ;;  %v1779_v4 = vmul.f32 %v3749_v0, %v3749_v0 }
 0x1a6   :  { %v1603_v5 = vpop.f32.mrf.mxu1 }
 0x1a7   :  { %v3753_v6 = vadd.f32 %v1603_v5, %v1314_v3  ;;  %1868 = vadd.xlane.f32.xlu1 %v1779_v4  ;;  %v1316_v7 = vpop.f32.mrf.mxu0 }
 0x1a8   :  { %v1605_v9 = vpop.f32.mrf.mxu1 }
 0x1a9   :  { %v1317_v12 = vpop.f32.mrf.mxu0  ;;  %v1780_v13 = vmul.f32 %v3753_v6, %v3753_v6 }
 0x1aa   :  { %v1606_v14 = vpop.f32.mrf.mxu1 }
 0x1ab   :  { %v3757_v15 = vadd.f32 %v1606_v14, %v1317_v12  ;;  %1870 = vadd.xlane.f32.xlu0 %v1780_v13  ;;  %v1319_v16 = vpop.f32.mrf.mxu0 }
 0x1ac   :  { %v1608_v19 = vpop.f32.mrf.mxu1 }
 0x1ad   :  { %v1322_v22 = vpop.f32.mrf.mxu0  ;;  %v1781_v23 = vmul.f32 %v3757_v15, %v3757_v15 }
 0x1ae   :  { %v1611_v24 = vpop.f32.mrf.mxu1 }
 0x1af   :  { %v3761_v25 = vadd.f32 %v1611_v24, %v1322_v22  ;;  %1872 = vadd.xlane.f32.xlu1 %v1781_v23  ;;  %v1324_v27 = vpop.f32.mrf.mxu0 }
 0x1b0   :  { %v1613_v28 = vpop.f32.mrf.mxu1 }
 0x1b1   :  { %v1325_v31 = vpop.f32.mrf.mxu0  ;;  %v1782_v33 = vmul.f32 %v3761_v25, %v3761_v25 }
 0x1b2   :  { %v1614_v34 = vpop.f32.mrf.mxu1 }
 0x1b3   :  { %v3765_v36 = vadd.f32 %v1614_v34, %v1325_v31  ;;  %1874 = vadd.xlane.f32.xlu0 %v1782_v33  ;;  %v1327_v38 = vpop.f32.mrf.mxu0 }
 0x1b4   :  { %v1616_v40 = vpop.f32.mrf.mxu1 }
 0x1b5   :  { %v1330_v42 = vpop.f32.mrf.mxu0  ;;  %v1783_v43 = vmul.f32 %v3765_v36, %v3765_v36 }
 0x1b6   :  { %v1619_v46 = vpop.f32.mrf.mxu1 }
 0x1b7   :  { %v3769_v55 = vadd.f32 %v1619_v46, %v1330_v42  ;;  %1876 = vadd.xlane.f32.xlu1 %v1783_v43  ;;  %v1332_v45 = vpop.f32.mrf.mxu0 }
 0x1b8   :  { %v1621_v47 = vpop.f32.mrf.mxu1 }
 0x1b9   :  { %v1333_v56 = vpop.f32.mrf.mxu0  ;;  %v1784_v57 = vmul.f32 %v3769_v55, %v3769_v55 }
 0x1ba   :  { %v1622_v51 = vpop.f32.mrf.mxu1 }
 0x1bb   :  { %v3773_v60 = vadd.f32 %v1622_v51, %v1333_v56  ;;  %1878 = vadd.xlane.f32.xlu0 %v1784_v57  ;;  %v1335_v58 = vpop.f32.mrf.mxu0 }
 0x1bc   :  { %v1624_v62 = vpop.f32.mrf.mxu1 }
 0x1bd   :  { %v1338_v1 = vpop.f32.mrf.mxu0  ;;  %v1785_v2 = vmul.f32 %v3773_v60, %v3773_v60 }
 0x1be   :  { %v1627_v3 = vpop.f32.mrf.mxu1 }
 0x1bf   :  { %v3777_v4 = vadd.f32 %v1627_v3, %v1338_v1  ;;  %1880 = vadd.xlane.f32.xlu1 %v1785_v2  ;;  %v1340_v5 = vpop.f32.mrf.mxu0 }
 0x1c0   :  { %v1629_v7 = vpop.f32.mrf.mxu1 }
 0x1c1   :  { %v1341_v9 = vpop.f32.mrf.mxu0  ;;  %v1786_v12 = vmul.f32 %v3777_v4, %v3777_v4 }
 0x1c2   :  { %v1630_v13 = vpop.f32.mrf.mxu1 }
 0x1c3   :  { %v3781_v14 = vadd.f32 %v1630_v13, %v1341_v9  ;;  %1882 = vadd.xlane.f32.xlu0 %v1786_v12  ;;  %v1343_v16 = vpop.f32.mrf.mxu0 }
 0x1c4   :  { %v1632_v19 = vpop.f32.mrf.mxu1 }
 0x1c5   :  { %v1346_v22 = vpop.f32.mrf.mxu0  ;;  %v1787_v23 = vmul.f32 %v3781_v14, %v3781_v14 }
 0x1c6   :  { %v1635_v24 = vpop.f32.mrf.mxu1 }
 0x1c7   :  { %v3785_v27 = vadd.f32 %v1635_v24, %v1346_v22  ;;  %1884 = vadd.xlane.f32.xlu1 %v1787_v23  ;;  %v1348_v28 = vpop.f32.mrf.mxu0 }
 0x1c8   :  { %v1637_v31 = vpop.f32.mrf.mxu1 }
 0x1c9   :  { %v1349_v33 = vpop.f32.mrf.mxu0  ;;  %v1788_v34 = vmul.f32 %v3785_v27, %v3785_v27 }
 0x1ca   :  { %v1638_v38 = vpop.f32.mrf.mxu1 }
 0x1cb   :  { %v3789_v40 = vadd.f32 %v1638_v38, %v1349_v33  ;;  %1886 = vadd.xlane.f32.xlu0 %v1788_v34  ;;  %v1351_v42 = vpop.f32.mrf.mxu0 }
 0x1cc   :  { %v1640_v43 = vpop.f32.mrf.mxu1  ;;  %v1819_v46 = vpop.xlane.xlu0 %1818 }
 0x1cd   :  { %v1946_v45 = vmax.f32 %v1819_v46, 1e-24  ;;  %v1354_v47 = vpop.f32.mrf.mxu0  ;;  %v1789_v56 = vmul.f32 %v3789_v40, %v3789_v40 }
 0x1ce   :  { %v1643_v57 = vpop.f32.mrf.mxu1 }
 0x1cf   :  { %2358 = vrsqrt.f32 %v1946_v45  ;;  %v3793_v51 = vadd.f32 %v1643_v57, %v1354_v47  ;;  %1888 = vadd.xlane.f32.xlu1 %v1789_v56  ;;  %v1356_v58 = vpop.f32.mrf.mxu0 }
 0x1d0   :  { %v1645_v62 = vpop.f32.mrf.mxu1  ;;  %v1821_v1 = vpop.xlane.xlu0 %1820 }
 0x1d1   :  { %v1947_v2 = vmax.f32 %v1821_v1, 1e-24  ;;  %v1357_v3 = vpop.f32.mrf.mxu0  ;;  %v1790_v5 = vmul.f32 %v3793_v51, %v3793_v51 }
 0x1d2   :  { %v1646_v7 = vpop.f32.mrf.mxu1 }
 0x1d3   :  { %2360 = vrsqrt.f32 %v1947_v2  ;;  %v3797_v9 = vadd.f32 %v1646_v7, %v1357_v3  ;;  %1890 = vadd.xlane.f32.xlu0 %v1790_v5  ;;  %v1359_v12 = vpop.f32.mrf.mxu0 }
 0x1d4   :  { %v1648_v13 = vpop.f32.mrf.mxu1  ;;  %v1823_v16 = vpop.xlane.xlu1 %1822 }
 0x1d5   :  { %v1948_v19 = vmax.f32 %v1823_v16, 1e-24  ;;  %v1362_v22 = vpop.f32.mrf.mxu0  ;;  %v1791_v23 = vmul.f32 %v3797_v9, %v3797_v9 }
 0x1d6   :  { %v1651_v24 = vpop.f32.mrf.mxu1 }
 0x1d7   :  { %2362 = vrsqrt.f32 %v1948_v19  ;;  %v3801_v28 = vadd.f32 %v1651_v24, %v1362_v22  ;;  %1892 = vadd.xlane.f32.xlu1 %v1791_v23  ;;  %v1364_v31 = vpop.f32.mrf.mxu0 }
 0x1d8   :  { %v1653_v33 = vpop.f32.mrf.mxu1  ;;  %v1825_v34 = vpop.xlane.xlu1 %1824 }
 0x1d9   :  { %v1949_v38 = vmax.f32 %v1825_v34, 1e-24  ;;  %v1365_v42 = vpop.f32.mrf.mxu0  ;;  %v1792_v43 = vmul.f32 %v3801_v28, %v3801_v28 }
 0x1da   :  { %v1654_v46 = vpop.f32.mrf.mxu1 }
 0x1db   :  { %2364 = vrsqrt.f32 %v1949_v38  ;;  %v3805_v45 = vadd.f32 %v1654_v46, %v1365_v42  ;;  %1894 = vadd.xlane.f32.xlu0 %v1792_v43  ;;  %v1367_v47 = vpop.f32.mrf.mxu0 }
 0x1dc   :  { %v2359_v56 = vpop.eup %2358  ;;  %v1656_v57 = vpop.f32.mrf.mxu1 }
 0x1dd   :  { %v1827_v58 = vpop.xlane.xlu0 %1826  ;;  %v2074_v62 = vmul.f32 %v2359_v56, %v3597_v21  ;;  %v1370_v2 = vpop.f32.mrf.mxu0  ;;  %v1793_v3 = vmul.f32 %v3805_v45, %v3805_v45 }
 0x1de   :  { %v1950_v1 = vmax.f32 %v1827_v58, 1e-24  ;;  %v1659_v5 = vpop.f32.mrf.mxu1 }
 0x1df   :  { %2138 = vst [vmem:[#allocation3] sm:$0xff] %v2074_v62  ;;  %v3810_v7 = vadd.f32 %v1659_v5, %v1370_v2  ;;  %1896 = vadd.xlane.f32.xlu1 %v1793_v3  ;;  %v1372_v12 = vpop.f32.mrf.mxu0 }
 0x1e0   :  { %2366 = vrsqrt.f32 %v1950_v1  ;;  %v2361_v13 = vpop.eup %2360  ;;  %v1661_v16 = vpop.f32.mrf.mxu1 }
 0x1e1   :  { %v1829_v19 = vpop.xlane.xlu1 %1828  ;;  %v2075_v22 = vmul.f32 %v2361_v13, %v3607_v32  ;;  %v1373_v24 = vpop.f32.mrf.mxu0  ;;  %v1794_v21 = vmul.f32 %v3810_v7, %v3810_v7 }
 0x1e2   :  { %v1951_v23 = vmax.f32 %v1829_v19, 1e-24  ;;  %v1662_v31 = vpop.f32.mrf.mxu1 }
 0x1e3   :  { %2139 = vst [vmem:[#allocation3 + $0x8] sm:$0xff] %v2075_v22  ;;  %v3815_v33 = vadd.f32 %v1662_v31, %v1373_v24  ;;  %1898 = vadd.xlane.f32.xlu0 %v1794_v21  ;;  %v1375_v34 = vpop.f32.mrf.mxu0 }
 0x1e4   :  { %2368 = vrsqrt.f32 %v1951_v23  ;;  %v2363_v38 = vpop.eup %2362  ;;  %v1664_v42 = vpop.f32.mrf.mxu1 }
 0x1e5   :  { %v1831_v43 = vpop.xlane.xlu0 %1830  ;;  %v2076_v46 = vmul.f32 %v2363_v38, %v3613_v41  ;;  %v1378_v56 = vpop.f32.mrf.mxu0  ;;  %v1795_v32 = vmul.f32 %v3815_v33, %v3815_v33 }
 0x1e6   :  { %v1952_v47 = vmax.f32 %v1831_v43, 1e-24  ;;  %v1667_v57 = vpop.f32.mrf.mxu1 }
 0x1e7   :  { %2140 = vst [vmem:[#allocation3 + $0x10] sm:$0xff] %v2076_v46  ;;  %v3820_v58 = vadd.f32 %v1667_v57, %v1378_v56  ;;  %1900 = vadd.xlane.f32.xlu1 %v1795_v32  ;;  %v1380_v62 = vpop.f32.mrf.mxu0 }
 0x1e8   :  { %2370 = vrsqrt.f32 %v1952_v47  ;;  %v2365_v1 = vpop.eup %2364  ;;  %v1669_v2 = vpop.f32.mrf.mxu1 }
 0x1e9   :  { %v1833_v3 = vpop.xlane.xlu1 %1832  ;;  %v2077_v5 = vmul.f32 %v2365_v1, %v3623_v49  ;;  %v1381_v13 = vpop.f32.mrf.mxu0  ;;  %v1796_v41 = vmul.f32 %v3820_v58, %v3820_v58 }
 0x1ea   :  { %v1953_v12 = vmax.f32 %v1833_v3, 1e-24  ;;  %v1670_v16 = vpop.f32.mrf.mxu1 }
 0x1eb   :  { %2141 = vst [vmem:[#allocation3 + $0x18] sm:$0xff] %v2077_v5  ;;  %v3825_v19 = vadd.f32 %v1670_v16, %v1381_v13  ;;  %1902 = vadd.xlane.f32.xlu0 %v1796_v41  ;;  %v1383_v22 = vpop.f32.mrf.mxu0 }
 0x1ec   :  { %2372 = vrsqrt.f32 %v1953_v12  ;;  %v1672_v24 = vpop.f32.mrf.mxu1  ;;  %v1835_v21 = vpop.xlane.xlu0 %1834 }
 0x1ed   :  { %v2367_v23 = vpop.eup %2366  ;;  %v1954_v34 = vmax.f32 %v1835_v21, 1e-24  ;;  %v1386_v38 = vpop.f32.mrf.mxu0  ;;  %v1797_v49 = vmul.f32 %v3825_v19, %v3825_v19 }
 0x1ee   :  { %v2078_v31 = vmul.f32 %v2367_v23, %v3629_v52  ;;  %v1675_v42 = vpop.f32.mrf.mxu1 }
 0x1ef   :  { %2374 = vrsqrt.f32 %v1954_v34  ;;  %v3830_v43 = vadd.f32 %v1675_v42, %v1386_v38  ;;  %1904 = vadd.xlane.f32.xlu1 %v1797_v49  ;;  %v1388_v46 = vpop.f32.mrf.mxu0 }
 0x1f0   :  { %2142 = vst [vmem:[#allocation3 + $0x20] sm:$0xff] %v2078_v31  ;;  %v1677_v56 = vpop.f32.mrf.mxu1  ;;  %v1837_v32 = vpop.xlane.xlu1 %1836 }
 0x1f1   :  { %v2369_v47 = vpop.eup %2368  ;;  %v1955_v62 = vmax.f32 %v1837_v32, 1e-24  ;;  %v1389_v1 = vpop.f32.mrf.mxu0  ;;  %v1798_v52 = vmul.f32 %v3830_v43, %v3830_v43 }
 0x1f2   :  { %v2079_v57 = vmul.f32 %v2369_v47, %v3639_v8  ;;  %v1678_v2 = vpop.f32.mrf.mxu1 }
 0x1f3   :  { %2376 = vrsqrt.f32 %v1955_v62  ;;  %v3835_v3 = vadd.f32 %v1678_v2, %v1389_v1  ;;  %1906 = vadd.xlane.f32.xlu0 %v1798_v52  ;;  %v1391_v5 = vpop.f32.mrf.mxu0 }
 0x1f4   :  { %2143 = vst [vmem:[#allocation3 + $0x28] sm:$0xff] %v2079_v57  ;;  %v1680_v13 = vpop.f32.mrf.mxu1  ;;  %v1839_v41 = vpop.xlane.xlu0 %1838 }
 0x1f5   :  { %v2371_v12 = vpop.eup %2370  ;;  %v1956_v22 = vmax.f32 %v1839_v41, 1e-24  ;;  %v1394_v23 = vpop.f32.mrf.mxu0  ;;  %v1799_v8 = vmul.f32 %v3835_v3, %v3835_v3 }
 0x1f6   :  { %v2080_v16 = vmul.f32 %v2371_v12, %v3645_v17  ;;  %v1683_v24 = vpop.f32.mrf.mxu1 }
 0x1f7   :  { %2378 = vrsqrt.f32 %v1956_v22  ;;  %v3840_v21 = vadd.f32 %v1683_v24, %v1394_v23  ;;  %1908 = vadd.xlane.f32.xlu1 %v1799_v8  ;;  %v1396_v31 = vpop.f32.mrf.mxu0 }
 0x1f8   :  { %2144 = vst [vmem:[#allocation3 + $0x30] sm:$0xff] %v2080_v16  ;;  %v1685_v38 = vpop.f32.mrf.mxu1  ;;  %v1841_v49 = vpop.xlane.xlu1 %1840 }
 0x1f9   :  { %v2373_v34 = vpop.eup %2372  ;;  %v1957_v46 = vmax.f32 %v1841_v49, 1e-24  ;;  %v1397_v47 = vpop.f32.mrf.mxu0  ;;  %v1800_v17 = vmul.f32 %v3840_v21, %v3840_v21 }
 0x1fa   :  { %v2081_v42 = vmul.f32 %v2373_v34, %v3655_v29  ;;  %v1686_v56 = vpop.f32.mrf.mxu1 }
 0x1fb   :  { %2380 = vrsqrt.f32 %v1957_v46  ;;  %v3845_v32 = vadd.f32 %v1686_v56, %v1397_v47  ;;  %1910 = vadd.xlane.f32.xlu0 %v1800_v17  ;;  %v1399_v57 = vpop.f32.mrf.mxu0 }
 0x1fc   :  { %2145 = vst [vmem:[#allocation3 + $0x38] sm:$0xff] %v2081_v42  ;;  %v2375_v62 = vpop.eup %2374  ;;  %v1688_v1 = vpop.f32.mrf.mxu1 }
 0x1fd   :  { %v1843_v52 = vpop.xlane.xlu0 %1842  ;;  %v2082_v2 = vmul.f32 %v2375_v62, %v3661_v39  ;;  %v1402_v12 = vpop.f32.mrf.mxu0  ;;  %v1801_v29 = vmul.f32 %v3845_v32, %v3845_v32 }
 0x1fe   :  { %v1958_v5 = vmax.f32 %v1843_v52, 1e-24  ;;  %v1691_v13 = vpop.f32.mrf.mxu1 }
 0x1ff   :  { %2146 = vst [vmem:[#allocation3 + $0x40] sm:$0xff] %v2082_v2  ;;  %v3850_v41 = vadd.f32 %v1691_v13, %v1402_v12  ;;  %1912 = vadd.xlane.f32.xlu1 %v1801_v29  ;;  %v1404_v16 = vpop.f32.mrf.mxu0 }
 0x200   :  { %2382 = vrsqrt.f32 %v1958_v5  ;;  %v2377_v22 = vpop.eup %2376  ;;  %v1693_v23 = vpop.f32.mrf.mxu1 }
 0x201   :  { %v1845_v8 = vpop.xlane.xlu1 %1844  ;;  %v2083_v24 = vmul.f32 %v2377_v22, %v3671_v63  ;;  %v1405_v34 = vpop.f32.mrf.mxu0  ;;  %v1802_v39 = vmul.f32 %v3850_v41, %v3850_v41 }
 0x202   :  { %v1959_v31 = vmax.f32 %v1845_v8, 1e-24  ;;  %v1694_v38 = vpop.f32.mrf.mxu1 }
 0x203   :  { %2147 = vst [vmem:[#allocation3 + $0x48] sm:$0xff] %v2083_v24  ;;  %v3855_v49 = vadd.f32 %v1694_v38, %v1405_v34  ;;  %1914 = vadd.xlane.f32.xlu0 %v1802_v39  ;;  %v1407_v42 = vpop.f32.mrf.mxu0 }
 0x204   :  { %2384 = vrsqrt.f32 %v1959_v31  ;;  %v2379_v46 = vpop.eup %2378  ;;  %v1696_v47 = vpop.f32.mrf.mxu1 }
 0x205   :  { %v1847_v17 = vpop.xlane.xlu0 %1846  ;;  %v2084_v56 = vmul.f32 %v2379_v46, %v3677_v59  ;;  %v1410_v62 = vpop.f32.mrf.mxu0  ;;  %v1803_v63 = vmul.f32 %v3855_v49, %v3855_v49 }
 0x206   :  { %v1960_v57 = vmax.f32 %v1847_v17, 1e-24  ;;  %v1699_v1 = vpop.f32.mrf.mxu1 }
 0x207   :  { %2148 = vst [vmem:[#allocation3 + $0x50] sm:$0xff] %v2084_v56  ;;  %v3860_v52 = vadd.f32 %v1699_v1, %v1410_v62  ;;  %1916 = vadd.xlane.f32.xlu1 %v1803_v63  ;;  %v1412_v2 = vpop.f32.mrf.mxu0 }
 0x208   :  { %2386 = vrsqrt.f32 %v1960_v57  ;;  %v2381_v5 = vpop.eup %2380  ;;  %v1701_v12 = vpop.f32.mrf.mxu1 }
 0x209   :  { %v1849_v29 = vpop.xlane.xlu1 %1848  ;;  %v2085_v13 = vmul.f32 %v2381_v5, %v3687_v10  ;;  %v1413_v22 = vpop.f32.mrf.mxu0  ;;  %v1804_v59 = vmul.f32 %v3860_v52, %v3860_v52 }
 0x20a   :  { %v1961_v16 = vmax.f32 %v1849_v29, 1e-24  ;;  %v1702_v23 = vpop.f32.mrf.mxu1 }
 0x20b   :  { %2149 = vst [vmem:[#allocation3 + $0x58] sm:$0xff] %v2085_v13  ;;  %v3865_v8 = vadd.f32 %v1702_v23, %v1413_v22  ;;  %1918 = vadd.xlane.f32.xlu0 %v1804_v59  ;;  %v1415_v24 = vpop.f32.mrf.mxu0 }
 0x20c   :  { %2388 = vrsqrt.f32 %v1961_v16  ;;  %v1704_v34 = vpop.f32.mrf.mxu1  ;;  %v1851_v39 = vpop.xlane.xlu0 %1850 }
 0x20d   :  { %v2383_v31 = vpop.eup %2382  ;;  %v1962_v42 = vmax.f32 %v1851_v39, 1e-24  ;;  %v1418_v46 = vpop.f32.mrf.mxu0  ;;  %v1805_v10 = vmul.f32 %v3865_v8, %v3865_v8 }
 0x20e   :  { %v2086_v38 = vmul.f32 %v2383_v31, %v3693_v20  ;;  %v1707_v47 = vpop.f32.mrf.mxu1 }
 0x20f   :  { %2390 = vrsqrt.f32 %v1962_v42  ;;  %v3870_v17 = vadd.f32 %v1707_v47, %v1418_v46  ;;  %1920 = vadd.xlane.f32.xlu1 %v1805_v10  ;;  %v1420_v56 = vpop.f32.mrf.mxu0 }
 0x210   :  { %2150 = vst [vmem:[#allocation3 + $0x60] sm:$0xff] %v2086_v38  ;;  %v1709_v62 = vpop.f32.mrf.mxu1  ;;  %v1853_v63 = vpop.xlane.xlu1 %1852 }
 0x211   :  { %v2385_v57 = vpop.eup %2384  ;;  %v1963_v2 = vmax.f32 %v1853_v63, 1e-24  ;;  %v1421_v5 = vpop.f32.mrf.mxu0  ;;  %v1806_v20 = vmul.f32 %v3870_v17, %v3870_v17 }
 0x212   :  { %v2087_v1 = vmul.f32 %v2385_v57, %v3701_v30  ;;  %v1710_v12 = vpop.f32.mrf.mxu1 }
 0x213   :  { %2392 = vrsqrt.f32 %v1963_v2  ;;  %v3875_v29 = vadd.f32 %v1710_v12, %v1421_v5  ;;  %1922 = vadd.xlane.f32.xlu0 %v1806_v20  ;;  %v1423_v13 = vpop.f32.mrf.mxu0 }
 0x214   :  { %2151 = vst [vmem:[#allocation3 + $0x68] sm:$0xff] %v2087_v1  ;;  %v1712_v22 = vpop.f32.mrf.mxu1  ;;  %v1855_v59 = vpop.xlane.xlu0 %1854 }
 0x215   :  { %v2387_v16 = vpop.eup %2386  ;;  %v1964_v24 = vmax.f32 %v1855_v59, 1e-24  ;;  %v1426_v31 = vpop.f32.mrf.mxu0  ;;  %v1807_v30 = vmul.f32 %v3875_v29, %v3875_v29 }
 0x216   :  { %v2088_v23 = vmul.f32 %v2387_v16, %v3705_v37  ;;  %v1715_v34 = vpop.f32.mrf.mxu1 }
 0x217   :  { %2394 = vrsqrt.f32 %v1964_v24  ;;  %v3880_v39 = vadd.f32 %v1715_v34, %v1426_v31  ;;  %1924 = vadd.xlane.f32.xlu1 %v1807_v30  ;;  %v1428_v38 = vpop.f32.mrf.mxu0 }
 0x218   :  { %2152 = vst [vmem:[#allocation3 + $0x70] sm:$0xff] %v2088_v23  ;;  %v1717_v46 = vpop.f32.mrf.mxu1  ;;  %v1857_v10 = vpop.xlane.xlu1 %1856 }
 0x219   :  { %v2389_v42 = vpop.eup %2388  ;;  %v1965_v56 = vmax.f32 %v1857_v10, 1e-24  ;;  %v1429_v57 = vpop.f32.mrf.mxu0  ;;  %v1808_v37 = vmul.f32 %v3880_v39, %v3880_v39 }
 0x21a   :  { %v2089_v47 = vmul.f32 %v2389_v42, %v3709_v44  ;;  %v1718_v62 = vpop.f32.mrf.mxu1 }
 0x21b   :  { %2396 = vrsqrt.f32 %v1965_v56  ;;  %v3885_v63 = vadd.f32 %v1718_v62, %v1429_v57  ;;  %1926 = vadd.xlane.f32.xlu0 %v1808_v37  ;;  %v1431_v1 = vpop.f32.mrf.mxu0 }
 0x21c   :  { %2153 = vst [vmem:[#allocation3 + $0x78] sm:$0xff] %v2089_v47  ;;  %v2391_v2 = vpop.eup %2390  ;;  %v1720_v5 = vpop.f32.mrf.mxu1 }
 0x21d   :  { %v1859_v20 = vpop.xlane.xlu0 %1858  ;;  %v2090_v12 = vmul.f32 %v2391_v2, %v3713_v48  ;;  %v1434_v16 = vpop.f32.mrf.mxu0  ;;  %v1809_v44 = vmul.f32 %v3885_v63, %v3885_v63 }
 0x21e   :  { %v1966_v13 = vmax.f32 %v1859_v20, 1e-24  ;;  %v1723_v22 = vpop.f32.mrf.mxu1 }
 0x21f   :  { %2154 = vst [vmem:[#allocation3 + $0x80] sm:$0xff] %v2090_v12  ;;  %v3890_v59 = vadd.f32 %v1723_v22, %v1434_v16  ;;  %1928 = vadd.xlane.f32.xlu1 %v1809_v44  ;;  %v1436_v23 = vpop.f32.mrf.mxu0 }
 0x220   :  { %2398 = vrsqrt.f32 %v1966_v13  ;;  %v2393_v24 = vpop.eup %2392  ;;  %v1725_v31 = vpop.f32.mrf.mxu1 }
 0x221   :  { %v1861_v30 = vpop.xlane.xlu1 %1860  ;;  %v2091_v34 = vmul.f32 %v2393_v24, %v3717_v61  ;;  %v1437_v42 = vpop.f32.mrf.mxu0  ;;  %v1810_v48 = vmul.f32 %v3890_v59, %v3890_v59 }
 0x222   :  { %v1967_v38 = vmax.f32 %v1861_v30, 1e-24  ;;  %v1726_v46 = vpop.f32.mrf.mxu1 }
 0x223   :  { %2155 = vst [vmem:[#allocation3 + $0x88] sm:$0xff] %v2091_v34  ;;  %v3895_v10 = vadd.f32 %v1726_v46, %v1437_v42  ;;  %1930 = vadd.xlane.f32.xlu0 %v1810_v48  ;;  %v1439_v47 = vpop.f32.mrf.mxu0 }
 0x224   :  { %2400 = vrsqrt.f32 %v1967_v38  ;;  %v2395_v56 = vpop.eup %2394  ;;  %v1728_v57 = vpop.f32.mrf.mxu1 }
 0x225   :  { %v1863_v37 = vpop.xlane.xlu0 %1862  ;;  %v2092_v62 = vmul.f32 %v2395_v56, %v3721_v53  ;;  %v1442_v2 = vpop.f32.mrf.mxu0  ;;  %v1811_v61 = vmul.f32 %v3895_v10, %v3895_v10 }
 0x226   :  { %v1968_v1 = vmax.f32 %v1863_v37, 1e-24  ;;  %v1731_v5 = vpop.f32.mrf.mxu1 }
 0x227   :  { %2156 = vst [vmem:[#allocation3 + $0x90] sm:$0xff] %v2092_v62  ;;  %v3900_v20 = vadd.f32 %v1731_v5, %v1442_v2  ;;  %1932 = vadd.xlane.f32.xlu1 %v1811_v61  ;;  %v1444_v12 = vpop.f32.mrf.mxu0 }
 0x228   :  { %2402 = vrsqrt.f32 %v1968_v1  ;;  %v2397_v13 = vpop.eup %2396  ;;  %v1733_v16 = vpop.f32.mrf.mxu1 }
 0x229   :  { %v1865_v44 = vpop.xlane.xlu1 %1864  ;;  %v2093_v22 = vmul.f32 %v2397_v13, %v3725_v11  ;;  %v1445_v24 = vpop.f32.mrf.mxu0  ;;  %v1812_v53 = vmul.f32 %v3900_v20, %v3900_v20 }
 0x22a   :  { %v1969_v23 = vmax.f32 %v1865_v44, 1e-24  ;;  %v1734_v31 = vpop.f32.mrf.mxu1 }
 0x22b   :  { %2157 = vst [vmem:[#allocation3 + $0x98] sm:$0xff] %v2093_v22  ;;  %v3905_v30 = vadd.f32 %v1734_v31, %v1445_v24  ;;  %1934 = vadd.xlane.f32.xlu0 %v1812_v53  ;;  %v1447_v34 = vpop.f32.mrf.mxu0 }
 0x22c   :  { %2404 = vrsqrt.f32 %v1969_v23  ;;  %v1736_v42 = vpop.f32.mrf.mxu1  ;;  %v1867_v48 = vpop.xlane.xlu0 %1866 }
 0x22d   :  { %v2399_v38 = vpop.eup %2398  ;;  %v1970_v47 = vmax.f32 %v1867_v48, 1e-24  ;;  %v1450_v56 = vpop.f32.mrf.mxu0  ;;  %v1813_v11 = vmul.f32 %v3905_v30, %v3905_v30 }
 0x22e   :  { %v2094_v46 = vmul.f32 %v2399_v38, %v3729_v18  ;;  %v1739_v57 = vpop.f32.mrf.mxu1 }
 0x22f   :  { %2406 = vrsqrt.f32 %v1970_v47  ;;  %v3910_v37 = vadd.f32 %v1739_v57, %v1450_v56  ;;  %1936 = vadd.xlane.f32.xlu1 %v1813_v11  ;;  %v1452_v62 = vpop.f32.mrf.mxu0 }
 0x230   :  { %2158 = vst [vmem:[#allocation3 + $0xa0] sm:$0xff] %v2094_v46  ;;  %v1741_v2 = vpop.f32.mrf.mxu1  ;;  %v1869_v61 = vpop.xlane.xlu1 %1868 }
 0x231   :  { %v2401_v1 = vpop.eup %2400  ;;  %v1971_v12 = vmax.f32 %v1869_v61, 1e-24  ;;  %v1453_v13 = vpop.f32.mrf.mxu0  ;;  %v1814_v18 = vmul.f32 %v3910_v37, %v3910_v37 }
 0x232   :  { %v2095_v5 = vmul.f32 %v2401_v1, %v3733_v26  ;;  %v1742_v16 = vpop.f32.mrf.mxu1 }
 0x233   :  { %2408 = vrsqrt.f32 %v1971_v12  ;;  %v3915_v44 = vadd.f32 %v1742_v16, %v1453_v13  ;;  %1938 = vadd.xlane.f32.xlu0 %v1814_v18  ;;  %v1455_v22 = vpop.f32.mrf.mxu0 }
 0x234   :  { %2159 = vst [vmem:[#allocation3 + $0xa8] sm:$0xff] %v2095_v5  ;;  %v1744_v24 = vpop.f32.mrf.mxu1  ;;  %v1871_v53 = vpop.xlane.xlu0 %1870 }
 0x235   :  { %v2403_v23 = vpop.eup %2402  ;;  %v1972_v34 = vmax.f32 %v1871_v53, 1e-24  ;;  %v1458_v38 = vpop.f32.mrf.mxu0  ;;  %v1815_v26 = vmul.f32 %v3915_v44, %v3915_v44 }
 0x236   :  { %v2096_v31 = vmul.f32 %v2403_v23, %v3737_v35  ;;  %v1747_v42 = vpop.f32.mrf.mxu1 }
 0x237   :  { %2410 = vrsqrt.f32 %v1972_v34  ;;  %v3920_v48 = vadd.f32 %v1747_v42, %v1458_v38  ;;  %1940 = vadd.xlane.f32.xlu1 %v1815_v26  ;;  %v1460_v46 = vpop.f32.mrf.mxu0 }
 0x238   :  { %2160 = vst [vmem:[#allocation3 + $0xb0] sm:$0xff] %v2096_v31  ;;  %v1749_v56 = vpop.f32.mrf.mxu1  ;;  %v1873_v11 = vpop.xlane.xlu1 %1872 }
 0x239   :  { %v2405_v47 = vpop.eup %2404  ;;  %v1973_v62 = vmax.f32 %v1873_v11, 1e-24  ;;  %v1461_v1 = vpop.f32.mrf.mxu0  ;;  %v1816_v35 = vmul.f32 %v3920_v48, %v3920_v48 }
 0x23a   :  { %v2097_v57 = vmul.f32 %v2405_v47, %v3741_v54  ;;  %v1750_v2 = vpop.f32.mrf.mxu1 }
 0x23b   :  { %2412 = vrsqrt.f32 %v1973_v62  ;;  %v3925_v61 = vadd.f32 %v1750_v2, %v1461_v1  ;;  %1942 = vadd.xlane.f32.xlu0 %v1816_v35  ;;  %v1463_v5 = vpop.f32.mrf.mxu0 }
 0x23c   :  { %2161 = vst [vmem:[#allocation3 + $0xb8] sm:$0xff] %v2097_v57  ;;  %v2407_v12 = vpop.eup %2406  ;;  %v1752_v13 = vpop.f32.mrf.mxu1 }
 0x23d   :  { %v1875_v18 = vpop.xlane.xlu0 %1874  ;;  %v2098_v16 = vmul.f32 %v2407_v12, %v3745_v50  ;;  %v1817_v54 = vmul.f32 %v3925_v61, %v3925_v61 }
 0x23e   :  { %v1974_v22 = vmax.f32 %v1875_v18, 1e-24 }
 0x23f   :  { %2162 = vst [vmem:[#allocation3 + $0xc0] sm:$0xff] %v2098_v16  ;;  %1944 = vadd.xlane.f32.xlu1 %v1817_v54 }
 0x240   :  { %2414 = vrsqrt.f32 %v1974_v22  ;;  %v2409_v23 = vpop.eup %2408  ;;  %v1877_v24 = vpop.xlane.xlu1 %1876 }
 0x241   :  { %v2099_v53 = vmul.f32 %v2409_v23, %v3749_v0  ;;  %v1975_v31 = vmax.f32 %v1877_v24, 1e-24 }
 0x243   :  { %2163 = vst [vmem:[#allocation3 + $0xc8] sm:$0xff] %v2099_v53  ;;  %2416 = vrsqrt.f32 %v1975_v31 }
 0x244   :  { %v2411_v34 = vpop.eup %2410  ;;  %v1879_v38 = vpop.xlane.xlu0 %1878 }
 0x245   :  { %v2100_v26 = vmul.f32 %v2411_v34, %v3753_v6  ;;  %v1976_v42 = vmax.f32 %v1879_v38, 1e-24 }
 0x247   :  { %2164 = vst [vmem:[#allocation3 + $0xd0] sm:$0xff] %v2100_v26  ;;  %2418 = vrsqrt.f32 %v1976_v42 }
 0x248   :  { %v2413_v50 = vpop.eup %2412  ;;  %v1881_v46 = vpop.xlane.xlu1 %1880 }
 0x249   :  { %v2101_v47 = vmul.f32 %v2413_v50, %v3757_v15  ;;  %v1977_v56 = vmax.f32 %v1881_v46, 1e-24 }
 0x24b   :  { %2165 = vst [vmem:[#allocation3 + $0xd8] sm:$0xff] %v2101_v47  ;;  %2420 = vrsqrt.f32 %v1977_v56 }
 0x24c   :  { %v1883_v57 = vpop.xlane.xlu0 %1882 }
 0x24d   :  { %v2415_v11 = vpop.eup %2414  ;;  %v1978_v62 = vmax.f32 %v1883_v57, 1e-24 }
 0x24e   :  { %v2102_v0 = vmul.f32 %v2415_v11, %v3761_v25 }
 0x24f   :  { %2422 = vrsqrt.f32 %v1978_v62 }
 0x250   :  { %2166 = vst [vmem:[#allocation3 + $0xe0] sm:$0xff] %v2102_v0  ;;  %v2417_v1 = vpop.eup %2416  ;;  %v1885_v35 = vpop.xlane.xlu1 %1884 }
 0x251   :  { %v2103_v6 = vmul.f32 %v2417_v1, %v3765_v36  ;;  %v1979_v2 = vmax.f32 %v1885_v35, 1e-24 }
 0x253   :  { %2167 = vst [vmem:[#allocation3 + $0xe8] sm:$0xff] %v2103_v6  ;;  %2424 = vrsqrt.f32 %v1979_v2 }
 0x254   :  { %v2419_v5 = vpop.eup %2418  ;;  %v1887_v12 = vpop.xlane.xlu0 %1886 }
 0x255   :  { %v2104_v15 = vmul.f32 %v2419_v5, %v3769_v55  ;;  %v1980_v13 = vmax.f32 %v1887_v12, 1e-24 }
 0x257   :  { %2168 = vst [vmem:[#allocation3 + $0xf0] sm:$0xff] %v2104_v15  ;;  %2426 = vrsqrt.f32 %v1980_v13 }
 0x258   :  { %v2421_v18 = vpop.eup %2420  ;;  %v1889_v16 = vpop.xlane.xlu1 %1888 }
 0x259   :  { %v2105_v25 = vmul.f32 %v2421_v18, %v3773_v60  ;;  %v1981_v22 = vmax.f32 %v1889_v16, 1e-24 }
 0x25b   :  { %2169 = vst [vmem:[#allocation3 + $0xf8] sm:$0xff] %v2105_v25  ;;  %2428 = vrsqrt.f32 %v1981_v22 }
 0x25c   :  { %v2423_v54 = vpop.eup %2422  ;;  %v1891_v23 = vpop.xlane.xlu0 %1890 }
 0x25d   :  { %v2106_v36 = vmul.f32 %v2423_v54, %v3777_v4  ;;  %v1982_v24 = vmax.f32 %v1891_v23, 1e-24 }
 0x25f   :  { %2170 = vst [vmem:[#allocation3 + $0x100] sm:$0xff] %v2106_v36  ;;  %2430 = vrsqrt.f32 %v1982_v24 }
 0x260   :  { %v2425_v53 = vpop.eup %2424  ;;  %v1893_v31 = vpop.xlane.xlu1 %1892 }
 0x261   :  { %v2107_v55 = vmul.f32 %v2425_v53, %v3781_v14  ;;  %v1983_v34 = vmax.f32 %v1893_v31, 1e-24 }
 0x263   :  { %2171 = vst [vmem:[#allocation3 + $0x108] sm:$0xff] %v2107_v55  ;;  %2432 = vrsqrt.f32 %v1983_v34 }
 0x264   :  { %v2427_v38 = vpop.eup %2426  ;;  %v1895_v26 = vpop.xlane.xlu0 %1894 }
 0x265   :  { %v2108_v60 = vmul.f32 %v2427_v38, %v3785_v27  ;;  %v1984_v42 = vmax.f32 %v1895_v26, 1e-24 }
 0x267   :  { %2172 = vst [vmem:[#allocation3 + $0x110] sm:$0xff] %v2108_v60  ;;  %2434 = vrsqrt.f32 %v1984_v42 }
 0x268   :  { %v2429_v50 = vpop.eup %2428  ;;  %v1897_v46 = vpop.xlane.xlu1 %1896 }
 0x269   :  { %v2109_v4 = vmul.f32 %v2429_v50, %v3789_v40  ;;  %v1985_v47 = vmax.f32 %v1897_v46, 1e-24 }
 0x26b   :  { %2173 = vst [vmem:[#allocation3 + $0x118] sm:$0xff] %v2109_v4  ;;  %2436 = vrsqrt.f32 %v1985_v47 }
 0x26c   :  { %v2431_v56 = vpop.eup %2430  ;;  %v1899_v11 = vpop.xlane.xlu0 %1898 }
 0x26d   :  { %v2110_v14 = vmul.f32 %v2431_v56, %v3793_v51  ;;  %v1986_v57 = vmax.f32 %v1899_v11, 1e-24 }
 0x26f   :  { %2174 = vst [vmem:[#allocation3 + $0x120] sm:$0xff] %v2110_v14  ;;  %2438 = vrsqrt.f32 %v1986_v57 }
 0x270   :  { %v2433_v0 = vpop.eup %2432  ;;  %v1901_v62 = vpop.xlane.xlu1 %1900 }
 0x271   :  { %v2111_v27 = vmul.f32 %v2433_v0, %v3797_v9  ;;  %v1987_v1 = vmax.f32 %v1901_v62, 1e-24 }
 0x273   :  { %2175 = vst [vmem:[#allocation3 + $0x128] sm:$0xff] %v2111_v27  ;;  %2440 = vrsqrt.f32 %v1987_v1 }
 0x274   :  { %v2435_v35 = vpop.eup %2434  ;;  %v1903_v6 = vpop.xlane.xlu0 %1902 }
 0x275   :  { %v2112_v40 = vmul.f32 %v2435_v35, %v3801_v28  ;;  %v1988_v2 = vmax.f32 %v1903_v6, 1e-24 }
 0x277   :  { %2176 = vst [vmem:[#allocation3 + $0x130] sm:$0xff] %v2112_v40  ;;  %2442 = vrsqrt.f32 %v1988_v2 }
 0x278   :  { %v2437_v5 = vpop.eup %2436  ;;  %v1905_v12 = vpop.xlane.xlu1 %1904 }
 0x279   :  { %v2113_v51 = vmul.f32 %v2437_v5, %v3805_v45  ;;  %v1989_v15 = vmax.f32 %v1905_v12, 1e-24 }
 0x27b   :  { %2177 = vst [vmem:[#allocation3 + $0x138] sm:$0xff] %v2113_v51  ;;  %2444 = vrsqrt.f32 %v1989_v15 }
 0x27c   :  { %v2439_v13 = vpop.eup %2438  ;;  %v1907_v18 = vpop.xlane.xlu0 %1906 }
 0x27d   :  { %v2114_v9 = vmul.f32 %v2439_v13, %v3810_v7  ;;  %v1990_v16 = vmax.f32 %v1907_v18, 1e-24 }
 0x27f   :  { %2178 = vst [vmem:[#allocation3 + $0x140] sm:$0xff] %v2114_v9  ;;  %2446 = vrsqrt.f32 %v1990_v16 }
 0x280   :  { %v2441_v25 = vpop.eup %2440  ;;  %v1909_v22 = vpop.xlane.xlu1 %1908 }
 0x281   :  { %v2115_v28 = vmul.f32 %v2441_v25, %v3815_v33  ;;  %v1991_v54 = vmax.f32 %v1909_v22, 1e-24 }
 0x283   :  { %2179 = vst [vmem:[#allocation3 + $0x148] sm:$0xff] %v2115_v28  ;;  %2448 = vrsqrt.f32 %v1991_v54 }
 0x284   :  { %v2443_v23 = vpop.eup %2442  ;;  %v1911_v36 = vpop.xlane.xlu0 %1910 }
 0x285   :  { %v2116_v45 = vmul.f32 %v2443_v23, %v3820_v58  ;;  %v1992_v24 = vmax.f32 %v1911_v36, 1e-24 }
 0x287   :  { %2180 = vst [vmem:[#allocation3 + $0x150] sm:$0xff] %v2116_v45  ;;  %2450 = vrsqrt.f32 %v1992_v24 }
 0x288   :  { %v2445_v53 = vpop.eup %2444  ;;  %v1913_v31 = vpop.xlane.xlu1 %1912 }
 0x289   :  { %v2117_v7 = vmul.f32 %v2445_v53, %v3825_v19  ;;  %v1993_v55 = vmax.f32 %v1913_v31, 1e-24 }
 0x28b   :  { %2181 = vst [vmem:[#allocation3 + $0x158] sm:$0xff] %v2117_v7  ;;  %2452 = vrsqrt.f32 %v1993_v55 }
 0x28c   :  { %v2447_v34 = vpop.eup %2446  ;;  %v1915_v38 = vpop.xlane.xlu0 %1914 }
 0x28d   :  { %v2118_v33 = vmul.f32 %v2447_v34, %v3830_v43  ;;  %v1994_v26 = vmax.f32 %v1915_v38, 1e-24 }
 0x28f   :  { %2182 = vst [vmem:[#allocation3 + $0x160] sm:$0xff] %v2118_v33  ;;  %2454 = vrsqrt.f32 %v1994_v26 }
 0x290   :  { %v2449_v60 = vpop.eup %2448  ;;  %v1917_v42 = vpop.xlane.xlu1 %1916 }
 0x291   :  { %v2119_v58 = vmul.f32 %v2449_v60, %v3835_v3  ;;  %v1995_v50 = vmax.f32 %v1917_v42, 1e-24 }
 0x293   :  { %2183 = vst [vmem:[#allocation3 + $0x168] sm:$0xff] %v2119_v58  ;;  %2456 = vrsqrt.f32 %v1995_v50 }
 0x294   :  { %v2451_v46 = vpop.eup %2450  ;;  %v1919_v4 = vpop.xlane.xlu0 %1918 }
 0x295   :  { %v2120_v19 = vmul.f32 %v2451_v46, %v3840_v21  ;;  %v1996_v47 = vmax.f32 %v1919_v4, 1e-24 }
 0x297   :  { %2184 = vst [vmem:[#allocation3 + $0x170] sm:$0xff] %v2120_v19  ;;  %2458 = vrsqrt.f32 %v1996_v47 }
 0x298   :  { %v2453_v56 = vpop.eup %2452  ;;  %v1921_v11 = vpop.xlane.xlu1 %1920 }
 0x299   :  { %v2121_v43 = vmul.f32 %v2453_v56, %v3845_v32  ;;  %v1997_v14 = vmax.f32 %v1921_v11, 1e-24 }
 0x29b   :  { %2185 = vst [vmem:[#allocation3 + $0x178] sm:$0xff] %v2121_v43  ;;  %2460 = vrsqrt.f32 %v1997_v14 }
 0x29c   :  { %v2455_v57 = vpop.eup %2454  ;;  %v1923_v0 = vpop.xlane.xlu0 %1922 }
 0x29d   :  { %v2122_v3 = vmul.f32 %v2455_v57, %v3850_v41  ;;  %v1998_v62 = vmax.f32 %v1923_v0, 1e-24 }
 0x29f   :  { %2186 = vst [vmem:[#allocation3 + $0x180] sm:$0xff] %v2122_v3  ;;  %2462 = vrsqrt.f32 %v1998_v62 }
 0x2a0   :  { %v2457_v27 = vpop.eup %2456  ;;  %v1925_v1 = vpop.xlane.xlu1 %1924 }
 0x2a1   :  { %v2123_v21 = vmul.f32 %v2457_v27, %v3855_v49  ;;  %v1999_v35 = vmax.f32 %v1925_v1, 1e-24 }
 0x2a3   :  { %2187 = vst [vmem:[#allocation3 + $0x188] sm:$0xff] %v2123_v21  ;;  %2464 = vrsqrt.f32 %v1999_v35 }
 0x2a4   :  { %v2459_v6 = vpop.eup %2458  ;;  %v1927_v40 = vpop.xlane.xlu0 %1926 }
 0x2a5   :  { %v2124_v32 = vmul.f32 %v2459_v6, %v3860_v52  ;;  %v2000_v2 = vmax.f32 %v1927_v40, 1e-24 }
 0x2a7   :  { %2188 = vst [vmem:[#allocation3 + $0x190] sm:$0xff] %v2124_v32  ;;  %2466 = vrsqrt.f32 %v2000_v2 }
 0x2a8   :  { %v2461_v5 = vpop.eup %2460  ;;  %v1929_v12 = vpop.xlane.xlu1 %1928 }
 0x2a9   :  { %v2125_v41 = vmul.f32 %v2461_v5, %v3865_v8  ;;  %v2001_v51 = vmax.f32 %v1929_v12, 1e-24 }
 0x2ab   :  { %2189 = vst [vmem:[#allocation3 + $0x198] sm:$0xff] %v2125_v41  ;;  %2468 = vrsqrt.f32 %v2001_v51 }
 0x2ac   :  { %v2463_v15 = vpop.eup %2462  ;;  %v1931_v13 = vpop.xlane.xlu0 %1930 }
 0x2ad   :  { %v2126_v49 = vmul.f32 %v2463_v15, %v3870_v17  ;;  %v2002_v18 = vmax.f32 %v1931_v13, 1e-24 }
 0x2af   :  { %2190 = vst [vmem:[#allocation3 + $0x1a0] sm:$0xff] %v2126_v49  ;;  %2470 = vrsqrt.f32 %v2002_v18 }
 0x2b0   :  { %v2465_v9 = vpop.eup %2464  ;;  %v1933_v16 = vpop.xlane.xlu1 %1932 }
 0x2b1   :  { %v2127_v52 = vmul.f32 %v2465_v9, %v3875_v29  ;;  %v2003_v25 = vmax.f32 %v1933_v16, 1e-24 }
 0x2b3   :  { %2191 = vst [vmem:[#allocation3 + $0x1a8] sm:$0xff] %v2127_v52  ;;  %2472 = vrsqrt.f32 %v2003_v25 }
 0x2b4   :  { %v2467_v22 = vpop.eup %2466  ;;  %v1935_v28 = vpop.xlane.xlu0 %1934 }
 0x2b5   :  { %v2128_v8 = vmul.f32 %v2467_v22, %v3880_v39  ;;  %v2004_v54 = vmax.f32 %v1935_v28, 1e-24 }
 0x2b7   :  { %2192 = vst [vmem:[#allocation3 + $0x1b0] sm:$0xff] %v2128_v8  ;;  %2474 = vrsqrt.f32 %v2004_v54 }
 0x2b8   :  { %v2469_v23 = vpop.eup %2468  ;;  %v1937_v36 = vpop.xlane.xlu1 %1936 }
 0x2b9   :  { %v2129_v17 = vmul.f32 %v2469_v23, %v3885_v63  ;;  %v2005_v45 = vmax.f32 %v1937_v36, 1e-24 }
 0x2bb   :  { %2193 = vst [vmem:[#allocation3 + $0x1b8] sm:$0xff] %v2129_v17  ;;  %2476 = vrsqrt.f32 %v2005_v45 }
 0x2bc   :  { %v2471_v24 = vpop.eup %2470  ;;  %v1939_v53 = vpop.xlane.xlu0 %1938 }
 0x2bd   :  { %v2130_v29 = vmul.f32 %v2471_v24, %v3890_v59  ;;  %v2006_v31 = vmax.f32 %v1939_v53, 1e-24 }
 0x2bf   :  { %2194 = vst [vmem:[#allocation3 + $0x1c0] sm:$0xff] %v2130_v29  ;;  %2478 = vrsqrt.f32 %v2006_v31 }
 0x2c0   :  { %v2473_v7 = vpop.eup %2472  ;;  %v1941_v55 = vpop.xlane.xlu1 %1940 }
 0x2c1   :  { %v2131_v39 = vmul.f32 %v2473_v7, %v3895_v10  ;;  %v2007_v34 = vmax.f32 %v1941_v55, 1e-24 }
 0x2c3   :  { %2195 = vst [vmem:[#allocation3 + $0x1c8] sm:$0xff] %v2131_v39  ;;  %2480 = vrsqrt.f32 %v2007_v34 }
 0x2c4   :  { %v2475_v38 = vpop.eup %2474  ;;  %v1943_v33 = vpop.xlane.xlu0 %1942 }
 0x2c5   :  { %v2132_v63 = vmul.f32 %v2475_v38, %v3900_v20  ;;  %v2008_v26 = vmax.f32 %v1943_v33, 1e-24 }
 0x2c7   :  { %2196 = vst [vmem:[#allocation3 + $0x1d0] sm:$0xff] %v2132_v63  ;;  %2482 = vrsqrt.f32 %v2008_v26 }
 0x2c8   :  { %v2477_v60 = vpop.eup %2476  ;;  %v1945_v42 = vpop.xlane.xlu1 %1944 }
 0x2c9   :  { %v2133_v59 = vmul.f32 %v2477_v60, %v3905_v30  ;;  %v2009_v58 = vmax.f32 %v1945_v42, 1e-24 }
 0x2cb   :  { %2197 = vst [vmem:[#allocation3 + $0x1d8] sm:$0xff] %v2133_v59  ;;  %2484 = vrsqrt.f32 %v2009_v58 }
 0x2cc   :  { %v2479_v50 = vpop.eup %2478 }
 0x2cd   :  { %v2134_v10 = vmul.f32 %v2479_v50, %v3910_v37 }
 0x2cf   :  { %2198 = vst [vmem:[#allocation3 + $0x1e0] sm:$0xff] %v2134_v10 }
 0x2d0   :  { %v2481_v46 = vpop.eup %2480 }
 0x2d1   :  { %v2135_v4 = vmul.f32 %v2481_v46, %v3915_v44 }
 0x2d3   :  { %2199 = vst [vmem:[#allocation3 + $0x1e8] sm:$0xff] %v2135_v4 }
 0x2d4   :  { %v2483_v19 = vpop.eup %2482 }
 0x2d5   :  { %v2136_v20 = vmul.f32 %v2483_v19, %v3920_v48 }
 0x2d7   :  { %2200 = vst [vmem:[#allocation3 + $0x1f0] sm:$0xff] %v2136_v20 }
 0x2d8   :  { %v2485_v47 = vpop.eup %2484 }
 0x2d9   :  { %v2137_v30 = vmul.f32 %v2485_v47, %v3925_v61 }
 0x2db   :  { %2201 = vst [vmem:[#allocation3 + $0x1f8] sm:$0xff] %v2137_v30 }
 0x2dc   :  { %2497 = shalt.err (!%p2494_p4)
}
 0x2dd   :  { %s2512_s26 = smov 128   ;;  %s2513_s27 = smov 8  }
 0x2de   :  { %2213 = dma.vmem_to_hbm [thread:$0]  %s2208_s24, 8192, %s3974_s2, [#allocation4], %s2512_s26, %s2512_s26, %s2513_s27  }
 0x2df   :  { %2508 = dma.done.wait [#allocation4], 8192  }
 0x2e0   :  { %2509 = vsyncadd [#allocation4], 4294959104 }
 0x2e1   :  { %2217 = vsyncpa [#allocation4], 1 }

</bundles_post_ra>
